<compile_context>
chip_gen: v5e
topology: v5e:2x2
jax: 0.10.0
libtpu: 0.0.40
codegen_flags: <defaults>
</compile_context>

<pallas_src>
import functools

import jax
import jax.numpy as jnp
import numpy as np
from jax.experimental import pallas as pl
from jax.experimental.pallas import tpu as pltpu


def _round_up(x, m):
    return (x + m - 1) // m * m


def _choose_bs_tile(B):
    """Batch-tile heuristic (review items 1-3):
    - small B: a single tile (padded to a sublane multiple of 8);
    - large B: 256..1024-row tiles, multiples of 256 (feeds v5e's 4 MXUs /
      v6e-v7x's 256-wide MXU, amortizes ~0.35us grid-step overhead) while
      keeping >= 2 grid steps so v7x's second TensorCore gets work through
      the "parallel" batch axis."""
    if B <= 256:
        return _round_up(max(B, 8), 8)
    return int(min(1024, _round_up((B + 1) // 2, 256)))


# ----------------------------------------------------------------------------
# Pallas kernel
# ----------------------------------------------------------------------------
def flow_kernel(x_ref, an0_loc_ref, an0_scale_ref,
                w0_ref, b0_ref, wm_ref, bm_ref, wf_ref, bf_ref,
                tA_ref, tB_ref, tb_ref, lA_ref, lB_ref, lb_ref,
                out_ref, logdet_ref,
                *, n_flows, n_mid, d1, d2, C, slope, n_sub, mxu_dtype):
    f32 = jnp.float32

    def lrelu(z):                         # exact LeakyReLU for slope in (0, 1)
        return jnp.maximum(z, slope * z)

    def mm(x, w):                         # bf16 MXU matmul, f32 accumulation
        return jnp.dot(x.astype(mxu_dtype), w, preferred_element_type=f32)

    def st_multi(zs, coup):
        """Fused s|t MLP tail for `n_sub` independent batch sub-chains.

        zs[c] is the (sub, 2H) layer-0 pre-activation (s block | t block).
        Processing sub-chains layer-by-layer keeps independent matmuls adjacent
        so the scheduler can overlap one chain's MXU work with the other
        chain's VPU/EUP phase."""
        zs = [lrelu(z) for z in zs]
        for l in range(n_mid):
            w = wm_ref[coup * n_mid + l]
            b = bm_ref[coup * n_mid + l]
            zs = [lrelu(mm(z, w) + b) for z in zs]
        wfin = wf_ref[coup]               # (2H, 2*d2): s cols [0,d2), t cols [d2,2d2)
        bfin = bf_ref[coup]
        zs = [mm(z, wfin) + bfin for z in zs]
        return [(jnp.tanh(z[:, :d2]), z[:, d2:2 * d2]) for z in zs]

    x = x_ref[...].astype(f32)
    h0 = an0_scale_ref[...] * (x + an0_loc_ref[...])      # flow-0 ActNorm (f32)

    sub = h0.shape[0] // n_sub
    A, B, Z0, SACC = [], [], [], []
    w00, b00 = w0_ref[0], b0_ref[0]
    for c in range(n_sub):
        hc = h0[c * sub:(c + 1) * sub]
        a = hc[:, :d1]
        b = hc[:, d1:]
        A.append(a)
        B.append(b)
        Z0.append(mm(a, w00) + b00)       # flow 0 / coupling 0 layer-0
        SACC.append(jnp.zeros((sub, d2), f32))

    for f in range(n_flows):
        # coupling 0: conditions on a, updates b (layer-0 already held in Z0)
        st = st_multi(Z0, 2 * f)
        for c in range(n_sub):
            s, t = st[c]
            B[c] = B[c] * jnp.exp(s) + t
            SACC[c] = SACC[c] + s
        # coupling 1: conditions on the *updated* b, updates a
        w01, b01 = w0_ref[2 * f + 1], b0_ref[2 * f + 1]
        st = st_multi([mm(B[c], w01) + b01 for c in range(n_sub)], 2 * f + 1)
        for c in range(n_sub):
            s, t = st[c]
            A[c] = A[c] * jnp.exp(s) + t
            SACC[c] = SACC[c] + s
        if f + 1 < n_flows:
            # chunk-swap + Shuffle + next ActNorm + next coupling-0 layer-0,
            # all folded into one (d1|d2, C+2H) bf16 matmul pair (no lane concat).
            tA, tB, tb = tA_ref[f], tB_ref[f], tb_ref[f]
            for c in range(n_sub):
                big = mm(A[c], tA) + mm(B[c], tB) + tb
                A[c] = big[:, :d1]
                B[c] = big[:, d1:C]
                Z0[c] = big[:, C:]
        else:
            # last flow: chunk-swap + Shuffle only, split along K
            lA, lB, lb = lA_ref[...], lB_ref[...], lb_ref[...]
            for c in range(n_sub):
                hout = mm(A[c], lA) + mm(B[c], lB) + lb
                out_ref[pl.ds(c * sub, sub), :] = hout
                # single cross-lane reduction for the data-dependent logdet
                logdet_ref[pl.ds(c * sub, sub), :] = jnp.sum(
                    SACC[c], axis=1, keepdims=True)


# ----------------------------------------------------------------------------
# Parameters (deterministic, synthetic) packed for the kernel
# ----------------------------------------------------------------------------
def init_params(key, in_channels, mid_channels, hidden_depth, n_flows,
                lrelu_slope=0.01, mxu_dtype=jnp.bfloat16):
    C = in_channels
    assert C % 2 == 0, "kernel supports even flow_in_channels only (see TODO)"
    d1 = C // 2 + C % 2                  # ceil(C/2) (torch.chunk first piece)
    d2 = C // 2
    n_layers = hidden_depth + 2          # Linear count in BasicFullyConnectedNet
    n_mid = n_layers - 2                 # hidden Linear layers (LeakyReLU after)
    mid = mid_channels
    H = max(mid, d2)                     # padded per-net hidden width
    H2 = 2 * H
    n_coup = 2 * n_flows
    dims = [d1] + [mid] * (hidden_depth + 1) + [d2]

    k_an1, k_an2, k_s, k_t, k_perm = jax.random.split(key, 5)
    an_loc = np.asarray(0.05 * jax.random.normal(k_an1, (n_flows, 1, C),
                                                 jnp.float32))
    an_scale = np.asarray(1.0 + 0.1 * jax.random.normal(k_an2, (n_flows, 1, C),
                                                        jnp.float32))

    def make_raw(k):
        nets = []
        for n in range(n_coup):
            layers = []
            for l in range(n_layers):
                fan_in, fan_out = dims[l], dims[l + 1]
                kk = jax.random.fold_in(jax.random.fold_in(k, n), l)
                bound = 1.0 / np.sqrt(fan_in)
                W = jax.random.uniform(kk, (fan_in, fan_out), jnp.float32,
                                       minval=-bound, maxval=bound)
                bv = jax.random.uniform(jax.random.fold_in(kk, 7), (fan_out,),
                                        jnp.float32, minval=-bound,
                                        maxval=bound)
                layers.append((np.asarray(W), np.asarray(bv)))
            nets.append(layers)
        return nets

    s_nets = make_raw(k_s)
    t_nets = make_raw(k_t)

    # ---- fused s|t packing --------------------------------------------------
    w0 = np.zeros((n_coup, d1, H2), np.float32)      # layer 0 (shared input x1)
    b0 = np.zeros((n_coup, 1, H2), np.float32)
    n_wm = max(n_coup * n_mid, 1)
    wm = np.zeros((n_wm, H2, H2), np.float32)        # hidden layers, block-diag
    bm = np.zeros((n_wm, 1, H2), np.float32)
    wf = np.zeros((n_coup, H2, 2 * d2), np.float32)  # final layer, dense 2*d2 cols
    bf = np.zeros((n_coup, 1, 2 * d2), np.float32)
    for n in range(n_coup):
        Ws, bs_ = s_nets[n][0]
        Wt, bt = t_nets[n][0]
        w0[n, :, :mid] = Ws
        w0[n, :, H:H + mid] = Wt
        b0[n, 0, :mid] = bs_
        b0[n, 0, H:H + mid] = bt
        for l in range(1, n_layers - 1):
            Ws, bs_ = s_nets[n][l]
            Wt, bt = t_nets[n][l]
            idx = n * n_mid + (l - 1)
            wm[idx, :mid, :mid] = Ws
            wm[idx, H:H + mid, H:H + mid] = Wt
            bm[idx, 0, :mid] = bs_
            bm[idx, 0, H:H + mid] = bt
        Ws, bs_ = s_nets[n][n_layers - 1]
        Wt, bt = t_nets[n][n_layers - 1]
        wf[n, :mid, :d2] = Ws
        wf[n, H:H + mid, d2:] = Wt
        bf[n, 0, :d2] = bs_
        bf[n, 0, d2:] = bt

    # ---- shuffle perms + fold (swap o shuffle o next-ActNorm [o next layer-0])
    perm_idx = np.zeros((n_flows, C), np.int64)
    for f in range(n_flows):
        perm_idx[f] = np.asarray(
            jax.random.permutation(jax.random.fold_in(k_perm, f), C))

    S = np.zeros((C, C), np.float32)     # kernel keeps [a|b]; torch order is [b|a]
    for j in range(C):
        S[(j + d1) % C, j] = 1.0

    mixes, mixbs = [], []
    for f in range(n_flows):
        P = np.zeros((C, C), np.float32)
        P[perm_idx[f], np.arange(C)] = 1.0     # shuffled[:, j] = h[:, idx[j]]
        M = S @ P
        bvec = np.zeros((C,), np.float32)
        if f + 1 < n_flows:                    # fold next flow's ActNorm
            M = M * an_scale[f + 1, 0][None, :]
            bvec = an_scale[f + 1, 0] * an_loc[f + 1, 0]
        mixes.append(M)
        mixbs.append(bvec)

    # transitions f -> f+1:  [a' | b' | z0'] = a @ tA[f] + b @ tB[f] + tb[f]
    n_tr = max(n_flows - 1, 1)
    tA = np.zeros((n_tr, d1, C + H2), np.float32)
    tB = np.zeros((n_tr, d2, C + H2), np.float32)
    tb = np.zeros((n_tr, 1, C + H2), np.float32)
    for f in range(n_flows - 1):
        M, bvec = mixes[f], mixbs[f]
        w0n = w0[2 * (f + 1)]                  # next flow coupling-0 layer-0
        b0n = b0[2 * (f + 1), 0]
        tA[f, :, :C] = M[:d1, :]
        tB[f, :, :C] = M[d1:, :]
        tb[f, 0, :C] = bvec
        tA[f, :, C:] = M[:d1, :d1] @ w0n
        tB[f, :, C:] = M[d1:, :d1] @ w0n
        tb[f, 0, C:] = bvec[:d1] @ w0n + b0n
    # last flow: plain swap+shuffle, split along K (no lane concat in kernel)
    lA = mixes[-1][:d1, :]
    lB = mixes[-1][d1:, :]
    lb = mixbs[-1][None, :]

    # Data-independent ActNorm logdet contribution (HxW = 1), all flows.
    logdet_const = float(np.sum(np.log(np.abs(an_scale))))

    def tobf(a):
        return jnp.asarray(a).astype(mxu_dtype)

    params = dict(
        an0_loc=jnp.asarray(an_loc[0]), an0_scale=jnp.asarray(an_scale[0]),
        w0=tobf(w0), b0=jnp.asarray(b0),
        wm=tobf(wm), bm=jnp.asarray(bm),
        wf=tobf(wf), bf=jnp.asarray(bf),
        tA=tobf(tA), tB=tobf(tB), tb=jnp.asarray(tb),
        lA=tobf(lA), lB=tobf(lB), lb=jnp.asarray(lb),
        logdet_const=jnp.float32(logdet_const))
    raw = dict(an_loc=jnp.asarray(an_loc), an_scale=jnp.asarray(an_scale),
               s_nets=s_nets, t_nets=t_nets, perm_idx=perm_idx)
    cfg = dict(n_flows=n_flows, n_layers=n_layers, n_mid=n_mid, d1=d1, d2=d2,
               C=C, H=H, slope=lrelu_slope, mxu_dtype=mxu_dtype)
    return params, raw, cfg


# ----------------------------------------------------------------------------
# Wrapper: UnsupervisedTransformer2.forward(x, reverse=False, train=False)
# ----------------------------------------------------------------------------
def unsupervised_transformer2_forward(x, params, cfg):
    if x.ndim == 2:
        x4 = x[:, :, None, None]
    else:
        x4 = x
    Bt, C = x4.shape[0], x4.shape[1]
    assert x4.shape[2] == 1 and x4.shape[3] == 1, \
        "flat/vector flow expects 1x1 spatial"
    assert C == cfg['C']
    x2d = x4.reshape(Bt, C).astype(jnp.float32)

    bs_tile = _choose_bs_tile(Bt)
    Bp = _round_up(Bt, bs_tile)
    if Bp != Bt:
        x2d = jnp.pad(x2d, ((0, Bp - Bt), (0, 0)))
    grid = (Bp // bs_tile,)
    # 2-way in-kernel interleave for big tiles (two independent chains overlap
    # MXU and VPU/EUP phases); single chain for small tiles.
    n_sub = 2 if (bs_tile >= 256 and bs_tile % 16 == 0) else 1

    n_flows, n_mid = cfg['n_flows'], cfg['n_mid']
    d1, d2, H = cfg['d1'], cfg['d2'], cfg['H']
    H2 = 2 * H
    n_coup = 2 * n_flows

    kernel = functools.partial(
        flow_kernel, n_flows=n_flows, n_mid=n_mid, d1=d1, d2=d2, C=C,
        slope=cfg['slope'], n_sub=n_sub, mxu_dtype=cfg['mxu_dtype'])

    def _resident(shape):
        nd = len(shape)
        return pl.BlockSpec(shape, lambda i, _nd=nd: (0,) * _nd)

    weight_names = ('an0_loc', 'an0_scale', 'w0', 'b0', 'wm', 'bm', 'wf', 'bf',
                    'tA', 'tB', 'tb', 'lA', 'lB', 'lb')
    in_specs = [pl.BlockSpec((bs_tile, C), lambda i: (i, 0))]
    in_specs += [_resident(tuple(params[k].shape)) for k in weight_names]
    out_specs = (pl.BlockSpec((bs_tile, C), lambda i: (i, 0)),
                 pl.BlockSpec((bs_tile, 1), lambda i: (i, 0)))

    # Advisory cost estimate (helps XLA schedule around a tiny custom call).
    per_row = 2 * d1 * H2
    per_row += n_coup * (n_mid * 2 * H2 * H2 + 2 * H2 * 2 * d2)
    per_row += n_flows * 2 * d2 * H2
    per_row += max(n_flows - 1, 0) * 2 * (d1 + d2) * (C + H2)
    per_row += 2 * (d1 + d2) * C
    flops = Bp * per_row
    transcendentals = Bp * n_coup * 2 * d2
    param_bytes = sum(int(np.prod(params[k].shape)) * params[k].dtype.itemsize
                      for k in weight_names)
    bytes_accessed = param_bytes + Bp * C * 4 * 2 + Bp * 4

    out2d, logdet = pl.pallas_call(
        kernel,
        grid=grid,
        out_shape=(jax.ShapeDtypeStruct((Bp, C), jnp.float32),
                   jax.ShapeDtypeStruct((Bp, 1), jnp.float32)),
        in_specs=in_specs,
        out_specs=out_specs,
        compiler_params=pltpu.CompilerParams(
            dimension_semantics=("parallel",)),
        cost_estimate=pl.CostEstimate(flops=int(flops),
                                      transcendentals=int(transcendentals),
                                      bytes_accessed=int(bytes_accessed)),
    )(x2d, *[params[k] for k in weight_names])

    out = out2d[:Bt, :, None, None]                    # (B, C, 1, 1) like torch
    logdet = logdet[:Bt, 0] + params['logdet_const']   # + ActNorm logdet const
    return out, logdet


# ----------------------------------------------------------------------------
# Pure-JAX reference (original un-fused algorithm, matching MXU precision)
# ----------------------------------------------------------------------------
def reference_forward(x2d, raw, cfg):
    n_flows, n_layers = cfg['n_flows'], cfg['n_layers']
    d1, d2, slope = cfg['d1'], cfg['d2'], cfg['slope']
    mxu_dtype = cfg['mxu_dtype']
    h = x2d.astype(jnp.float32)
    Bt = h.shape[0]
    logdet = jnp.zeros((Bt,), jnp.float32)

    def mlp(z, layers, use_tanh):
        n = len(layers)
        for l, (W, bv) in enumerate(layers):
            z = jnp.dot(z.astype(mxu_dtype), jnp.asarray(W).astype(mxu_dtype),
                        preferred_element_type=jnp.float32) + jnp.asarray(bv)
            if l < n - 1:
                z = jnp.where(z >= 0, z, slope * z)
            elif use_tanh:
                z = jnp.tanh(z)
        return z

    for f in range(n_flows):
        loc, scale = raw['an_loc'][f], raw['an_scale'][f]
        h = scale * (h + loc)
        logdet = logdet + jnp.sum(jnp.log(jnp.abs(scale)))
        for i in range(2):
            if i == 1:
                h = jnp.concatenate([h[:, d1:], h[:, :d1]], axis=1)
            x1, x2 = h[:, :d1], h[:, d1:]
            s = mlp(x1, raw['s_nets'][f * 2 + i], True)
            t = mlp(x1, raw['t_nets'][f * 2 + i], False)
            h = jnp.concatenate([x1, x2 * jnp.exp(s) + t], axis=1)
            logdet = logdet + jnp.sum(s, axis=1)
        h = h[:, raw['perm_idx'][f]]
    return h, logdet


# ----------------------------------------------------------------------------
if __name__ == "__main__":
    # torch kwargs: flow_in_channels=16, flow_mid_channels=32,
    # flow_hidden_depth=2, n_flows=4.
    B, C, MID, DEPTH, NFLOWS = 8, 16, 32, 2, 4

    key = jax.random.PRNGKey(0)
    k_x, k_p, k_x2 = jax.random.split(key, 3)
    params, raw, cfg = init_params(k_p, C, MID, DEPTH, NFLOWS)

    # Small demo batch (single tile).
    x = jax.random.normal(k_x, (B, C), jnp.float32)   # forward unsqueezes to (B,C,1,1)
    out, logdet = unsupervised_transformer2_forward(x, params, cfg)
    out, logdet = jax.block_until_ready((out, logdet))
    assert out.shape == (B, C, 1, 1) and logdet.shape == (B,)

    ref_out, ref_ld = reference_forward(x, raw, cfg)
    # Tolerances reflect end-to-end bf16 MXU matmuls (incl. the folded
    # swap/shuffle/ActNorm mix matrices) across 4 flows vs. the reference.
    np.testing.assert_allclose(np.asarray(out[:, :, 0, 0]), np.asarray(ref_out),
                               rtol=2e-2, atol=2e-2)
    np.testing.assert_allclose(np.asarray(logdet), np.asarray(ref_ld),
                               rtol=2e-2, atol=5e-2)

    # Larger batch: exercises the tiled batch grid (2 x 1024-row tiles, i.e.
    # >=2 steps for v7x megacore) and the 2-way in-kernel interleave.
    B2 = 2048
    x_big = jax.random.normal(k_x2, (B2, C), jnp.float32)
    out2, ld2 = unsupervised_transformer2_forward(x_big, params, cfg)
    out2, ld2 = jax.block_until_ready((out2, ld2))
    ref2, refld2 = reference_forward(x_big, raw, cfg)
    np.testing.assert_allclose(np.asarray(out2[:, :, 0, 0]), np.asarray(ref2),
                               rtol=2e-2, atol=2e-2)
    np.testing.assert_allclose(np.asarray(ld2), np.asarray(refld2),
                               rtol=2e-2, atol=5e-2)

    print("KERNEL_OK")
</pallas_src>

<mosaic_0001>
module attributes {stable_mosaic.version = 11 : i64} {
  func.func @flow_kernel(%arg0: i32, %arg1: memref<8x16xf32, #tpu.memory_space<vmem>>, %arg2: memref<1x16xf32, #tpu.memory_space<vmem>>, %arg3: memref<1x16xf32, #tpu.memory_space<vmem>>, %arg4: memref<8x8x64xbf16, #tpu.memory_space<vmem>>, %arg5: memref<8x1x64xf32, #tpu.memory_space<vmem>>, %arg6: memref<16x64x64xbf16, #tpu.memory_space<vmem>>, %arg7: memref<16x1x64xf32, #tpu.memory_space<vmem>>, %arg8: memref<8x64x16xbf16, #tpu.memory_space<vmem>>, %arg9: memref<8x1x16xf32, #tpu.memory_space<vmem>>, %arg10: memref<3x8x80xbf16, #tpu.memory_space<vmem>>, %arg11: memref<3x8x80xbf16, #tpu.memory_space<vmem>>, %arg12: memref<3x1x80xf32, #tpu.memory_space<vmem>>, %arg13: memref<8x16xbf16, #tpu.memory_space<vmem>>, %arg14: memref<8x16xbf16, #tpu.memory_space<vmem>>, %arg15: memref<1x16xf32, #tpu.memory_space<vmem>>, %arg16: memref<8x16xf32, #tpu.memory_space<vmem>>, %arg17: memref<8x1xf32, #tpu.memory_space<vmem>>) attributes {dimension_semantics = [#tpu.dimension_semantics<parallel>], iteration_bounds = array<i64: 1>, scalar_prefetch = 0 : i64, scratch_operands = 0 : i64, tpu.core_type = #tpu.core_type<tc>, window_params = [{transform_indices = @transform_0, window_bounds = array<i64: 8, 16>}, {pipeline_mode = #tpu.pipeline_mode<synchronous>, transform_indices = @transform_1, window_bounds = array<i64: 1, 16>}, {pipeline_mode = #tpu.pipeline_mode<synchronous>, transform_indices = @transform_2, window_bounds = array<i64: 1, 16>}, {pipeline_mode = #tpu.pipeline_mode<synchronous>, transform_indices = @transform_3, window_bounds = array<i64: 8, 8, 64>}, {pipeline_mode = #tpu.pipeline_mode<synchronous>, transform_indices = @transform_4, window_bounds = array<i64: 8, 1, 64>}, {pipeline_mode = #tpu.pipeline_mode<synchronous>, transform_indices = @transform_5, window_bounds = array<i64: 16, 64, 64>}, {pipeline_mode = #tpu.pipeline_mode<synchronous>, transform_indices = @transform_6, window_bounds = array<i64: 16, 1, 64>}, {pipeline_mode = #tpu.pipeline_mode<synchronous>, transform_indices = @transform_7, window_bounds = array<i64: 8, 64, 16>}, {pipeline_mode = #tpu.pipeline_mode<synchronous>, transform_indices = @transform_8, window_bounds = array<i64: 8, 1, 16>}, {pipeline_mode = #tpu.pipeline_mode<synchronous>, transform_indices = @transform_9, window_bounds = array<i64: 3, 8, 80>}, {pipeline_mode = #tpu.pipeline_mode<synchronous>, transform_indices = @transform_10, window_bounds = array<i64: 3, 8, 80>}, {pipeline_mode = #tpu.pipeline_mode<synchronous>, transform_indices = @transform_11, window_bounds = array<i64: 3, 1, 80>}, {pipeline_mode = #tpu.pipeline_mode<synchronous>, transform_indices = @transform_12, window_bounds = array<i64: 8, 16>}, {pipeline_mode = #tpu.pipeline_mode<synchronous>, transform_indices = @transform_13, window_bounds = array<i64: 8, 16>}, {pipeline_mode = #tpu.pipeline_mode<synchronous>, transform_indices = @transform_14, window_bounds = array<i64: 1, 16>}, {transform_indices = @transform_15, window_bounds = array<i64: 8, 16>}, {transform_indices = @transform_16, window_bounds = array<i64: 8, 1>}]} {
    %c0 = arith.constant 0 : index
    %c0_0 = arith.constant 0 : index
    %0 = vector.load %arg1[%c0, %c0_0] : memref<8x16xf32, #tpu.memory_space<vmem>>, vector<8x16xf32>
    %c0_1 = arith.constant 0 : index
    %c0_2 = arith.constant 0 : index
    %1 = vector.load %arg3[%c0_1, %c0_2] : memref<1x16xf32, #tpu.memory_space<vmem>>, vector<1x16xf32>
    %c0_3 = arith.constant 0 : index
    %c0_4 = arith.constant 0 : index
    %2 = vector.load %arg2[%c0_3, %c0_4] : memref<1x16xf32, #tpu.memory_space<vmem>>, vector<1x16xf32>
    %3 = vector.broadcast %2 : vector<1x16xf32> to vector<8x16xf32>
    %4 = arith.addf %0, %3 : vector<8x16xf32>
    %5 = vector.broadcast %1 : vector<1x16xf32> to vector<8x16xf32>
    %6 = arith.mulf %5, %4 : vector<8x16xf32>
    %c0_5 = arith.constant 0 : index
    %c0_6 = arith.constant 0 : index
    %c0_7 = arith.constant 0 : index
    %7 = vector.load %arg4[%c0_5, %c0_6, %c0_7] : memref<8x8x64xbf16, #tpu.memory_space<vmem>>, vector<1x8x64xbf16>
    %8 = vector.shape_cast %7 : vector<1x8x64xbf16> to vector<8x64xbf16>
    %c0_8 = arith.constant 0 : index
    %c0_9 = arith.constant 0 : index
    %c0_10 = arith.constant 0 : index
    %9 = vector.load %arg5[%c0_8, %c0_9, %c0_10] : memref<8x1x64xf32, #tpu.memory_space<vmem>>, vector<1x1x64xf32>
    %10 = vector.shape_cast %9 : vector<1x1x64xf32> to vector<1x64xf32>
    %11 = vector.extract_strided_slice %6 {offsets = [0, 0], sizes = [8, 8], strides = [1, 1]} : vector<8x16xf32> to vector<8x8xf32>
    %12 = vector.extract_strided_slice %6 {offsets = [0, 8], sizes = [8, 8], strides = [1, 1]} : vector<8x16xf32> to vector<8x8xf32>
    %13 = arith.truncf %11 : vector<8x8xf32> to vector<8x8xbf16>
    %cst = arith.constant dense<0.000000e+00> : vector<8x64xf32>
    %14 = tpu.matmul %13, %8, %cst {dimension_numbers = #tpu.dot_dimension_numbers<[1], [0], [0], [1], [0, 0, 1, 1], [], []>} : vector<8x8xbf16>, vector<8x64xbf16>, vector<8x64xf32> -> vector<8x64xf32>
    %15 = vector.broadcast %10 : vector<1x64xf32> to vector<8x64xf32>
    %16 = arith.addf %14, %15 : vector<8x64xf32>
    %cst_11 = arith.constant 0.000000e+00 : f32
    %17 = vector.broadcast %cst_11 : f32 to vector<8x8xf32>
    %cst_12 = arith.constant 0.00999999977 : f32
    %18 = vector.broadcast %cst_12 : f32 to vector<8x64xf32>
    %19 = arith.mulf %18, %16 : vector<8x64xf32>
    %20 = arith.maximumf %16, %19 : vector<8x64xf32>
    %c0_13 = arith.constant 0 : index
    %c0_14 = arith.constant 0 : index
    %c0_15 = arith.constant 0 : index
    %21 = vector.load %arg6[%c0_13, %c0_14, %c0_15] : memref<16x64x64xbf16, #tpu.memory_space<vmem>>, vector<1x64x64xbf16>
    %22 = vector.shape_cast %21 : vector<1x64x64xbf16> to vector<64x64xbf16>
    %c0_16 = arith.constant 0 : index
    %c0_17 = arith.constant 0 : index
    %c0_18 = arith.constant 0 : index
    %23 = vector.load %arg7[%c0_16, %c0_17, %c0_18] : memref<16x1x64xf32, #tpu.memory_space<vmem>>, vector<1x1x64xf32>
    %24 = vector.shape_cast %23 : vector<1x1x64xf32> to vector<1x64xf32>
    %25 = arith.truncf %20 : vector<8x64xf32> to vector<8x64xbf16>
    %cst_19 = arith.constant dense<0.000000e+00> : vector<8x64xf32>
    %26 = tpu.matmul %25, %22, %cst_19 {dimension_numbers = #tpu.dot_dimension_numbers<[1], [0], [0], [1], [0, 0, 1, 1], [], []>} : vector<8x64xbf16>, vector<64x64xbf16>, vector<8x64xf32> -> vector<8x64xf32>
    %27 = vector.broadcast %24 : vector<1x64xf32> to vector<8x64xf32>
    %28 = arith.addf %26, %27 : vector<8x64xf32>
    %cst_20 = arith.constant 0.00999999977 : f32
    %29 = vector.broadcast %cst_20 : f32 to vector<8x64xf32>
    %30 = arith.mulf %29, %28 : vector<8x64xf32>
    %31 = arith.maximumf %28, %30 : vector<8x64xf32>
    %c1 = arith.constant 1 : index
    %c0_21 = arith.constant 0 : index
    %c0_22 = arith.constant 0 : index
    %32 = vector.load %arg6[%c1, %c0_21, %c0_22] : memref<16x64x64xbf16, #tpu.memory_space<vmem>>, vector<1x64x64xbf16>
    %33 = vector.shape_cast %32 : vector<1x64x64xbf16> to vector<64x64xbf16>
    %c1_23 = arith.constant 1 : index
    %c0_24 = arith.constant 0 : index
    %c0_25 = arith.constant 0 : index
    %34 = vector.load %arg7[%c1_23, %c0_24, %c0_25] : memref<16x1x64xf32, #tpu.memory_space<vmem>>, vector<1x1x64xf32>
    %35 = vector.shape_cast %34 : vector<1x1x64xf32> to vector<1x64xf32>
    %36 = arith.truncf %31 : vector<8x64xf32> to vector<8x64xbf16>
    %cst_26 = arith.constant dense<0.000000e+00> : vector<8x64xf32>
    %37 = tpu.matmul %36, %33, %cst_26 {dimension_numbers = #tpu.dot_dimension_numbers<[1], [0], [0], [1], [0, 0, 1, 1], [], []>} : vector<8x64xbf16>, vector<64x64xbf16>, vector<8x64xf32> -> vector<8x64xf32>
    %38 = vector.broadcast %35 : vector<1x64xf32> to vector<8x64xf32>
    %39 = arith.addf %37, %38 : vector<8x64xf32>
    %cst_27 = arith.constant 0.00999999977 : f32
    %40 = vector.broadcast %cst_27 : f32 to vector<8x64xf32>
    %41 = arith.mulf %40, %39 : vector<8x64xf32>
    %42 = arith.maximumf %39, %41 : vector<8x64xf32>
    %c0_28 = arith.constant 0 : index
    %c0_29 = arith.constant 0 : index
    %c0_30 = arith.constant 0 : index
    %43 = vector.load %arg8[%c0_28, %c0_29, %c0_30] : memref<8x64x16xbf16, #tpu.memory_space<vmem>>, vector<1x64x16xbf16>
    %44 = vector.shape_cast %43 : vector<1x64x16xbf16> to vector<64x16xbf16>
    %c0_31 = arith.constant 0 : index
    %c0_32 = arith.constant 0 : index
    %c0_33 = arith.constant 0 : index
    %45 = vector.load %arg9[%c0_31, %c0_32, %c0_33] : memref<8x1x16xf32, #tpu.memory_space<vmem>>, vector<1x1x16xf32>
    %46 = vector.shape_cast %45 : vector<1x1x16xf32> to vector<1x16xf32>
    %47 = arith.truncf %42 : vector<8x64xf32> to vector<8x64xbf16>
    %cst_34 = arith.constant dense<0.000000e+00> : vector<8x16xf32>
    %48 = tpu.matmul %47, %44, %cst_34 {dimension_numbers = #tpu.dot_dimension_numbers<[1], [0], [0], [1], [0, 0, 1, 1], [], []>} : vector<8x64xbf16>, vector<64x16xbf16>, vector<8x16xf32> -> vector<8x16xf32>
    %49 = vector.broadcast %46 : vector<1x16xf32> to vector<8x16xf32>
    %50 = arith.addf %48, %49 : vector<8x16xf32>
    %51 = vector.extract_strided_slice %50 {offsets = [0, 0], sizes = [8, 8], strides = [1, 1]} : vector<8x16xf32> to vector<8x8xf32>
    %52 = math.tanh %51 : vector<8x8xf32>
    %53 = vector.extract_strided_slice %50 {offsets = [0, 8], sizes = [8, 8], strides = [1, 1]} : vector<8x16xf32> to vector<8x8xf32>
    %54 = math.exp %52 : vector<8x8xf32>
    %55 = arith.mulf %12, %54 : vector<8x8xf32>
    %56 = arith.addf %55, %53 : vector<8x8xf32>
    %57 = arith.addf %17, %52 : vector<8x8xf32>
    %c1_35 = arith.constant 1 : index
    %c0_36 = arith.constant 0 : index
    %c0_37 = arith.constant 0 : index
    %58 = vector.load %arg4[%c1_35, %c0_36, %c0_37] : memref<8x8x64xbf16, #tpu.memory_space<vmem>>, vector<1x8x64xbf16>
    %59 = vector.shape_cast %58 : vector<1x8x64xbf16> to vector<8x64xbf16>
    %c1_38 = arith.constant 1 : index
    %c0_39 = arith.constant 0 : index
    %c0_40 = arith.constant 0 : index
    %60 = vector.load %arg5[%c1_38, %c0_39, %c0_40] : memref<8x1x64xf32, #tpu.memory_space<vmem>>, vector<1x1x64xf32>
    %61 = vector.shape_cast %60 : vector<1x1x64xf32> to vector<1x64xf32>
    %62 = arith.truncf %56 : vector<8x8xf32> to vector<8x8xbf16>
    %cst_41 = arith.constant dense<0.000000e+00> : vector<8x64xf32>
    %63 = tpu.matmul %62, %59, %cst_41 {dimension_numbers = #tpu.dot_dimension_numbers<[1], [0], [0], [1], [0, 0, 1, 1], [], []>} : vector<8x8xbf16>, vector<8x64xbf16>, vector<8x64xf32> -> vector<8x64xf32>
    %64 = vector.broadcast %61 : vector<1x64xf32> to vector<8x64xf32>
    %65 = arith.addf %63, %64 : vector<8x64xf32>
    %cst_42 = arith.constant 0.00999999977 : f32
    %66 = vector.broadcast %cst_42 : f32 to vector<8x64xf32>
    %67 = arith.mulf %66, %65 : vector<8x64xf32>
    %68 = arith.maximumf %65, %67 : vector<8x64xf32>
    %c2 = arith.constant 2 : index
    %c0_43 = arith.constant 0 : index
    %c0_44 = arith.constant 0 : index
    %69 = vector.load %arg6[%c2, %c0_43, %c0_44] : memref<16x64x64xbf16, #tpu.memory_space<vmem>>, vector<1x64x64xbf16>
    %70 = vector.shape_cast %69 : vector<1x64x64xbf16> to vector<64x64xbf16>
    %c2_45 = arith.constant 2 : index
    %c0_46 = arith.constant 0 : index
    %c0_47 = arith.constant 0 : index
    %71 = vector.load %arg7[%c2_45, %c0_46, %c0_47] : memref<16x1x64xf32, #tpu.memory_space<vmem>>, vector<1x1x64xf32>
    %72 = vector.shape_cast %71 : vector<1x1x64xf32> to vector<1x64xf32>
    %73 = arith.truncf %68 : vector<8x64xf32> to vector<8x64xbf16>
    %cst_48 = arith.constant dense<0.000000e+00> : vector<8x64xf32>
    %74 = tpu.matmul %73, %70, %cst_48 {dimension_numbers = #tpu.dot_dimension_numbers<[1], [0], [0], [1], [0, 0, 1, 1], [], []>} : vector<8x64xbf16>, vector<64x64xbf16>, vector<8x64xf32> -> vector<8x64xf32>
    %75 = vector.broadcast %72 : vector<1x64xf32> to vector<8x64xf32>
    %76 = arith.addf %74, %75 : vector<8x64xf32>
    %cst_49 = arith.constant 0.00999999977 : f32
    %77 = vector.broadcast %cst_49 : f32 to vector<8x64xf32>
    %78 = arith.mulf %77, %76 : vector<8x64xf32>
    %79 = arith.maximumf %76, %78 : vector<8x64xf32>
    %c3 = arith.constant 3 : index
    %c0_50 = arith.constant 0 : index
    %c0_51 = arith.constant 0 : index
    %80 = vector.load %arg6[%c3, %c0_50, %c0_51] : memref<16x64x64xbf16, #tpu.memory_space<vmem>>, vector<1x64x64xbf16>
    %81 = vector.shape_cast %80 : vector<1x64x64xbf16> to vector<64x64xbf16>
    %c3_52 = arith.constant 3 : index
    %c0_53 = arith.constant 0 : index
    %c0_54 = arith.constant 0 : index
    %82 = vector.load %arg7[%c3_52, %c0_53, %c0_54] : memref<16x1x64xf32, #tpu.memory_space<vmem>>, vector<1x1x64xf32>
    %83 = vector.shape_cast %82 : vector<1x1x64xf32> to vector<1x64xf32>
    %84 = arith.truncf %79 : vector<8x64xf32> to vector<8x64xbf16>
    %cst_55 = arith.constant dense<0.000000e+00> : vector<8x64xf32>
    %85 = tpu.matmul %84, %81, %cst_55 {dimension_numbers = #tpu.dot_dimension_numbers<[1], [0], [0], [1], [0, 0, 1, 1], [], []>} : vector<8x64xbf16>, vector<64x64xbf16>, vector<8x64xf32> -> vector<8x64xf32>
    %86 = vector.broadcast %83 : vector<1x64xf32> to vector<8x64xf32>
    %87 = arith.addf %85, %86 : vector<8x64xf32>
    %cst_56 = arith.constant 0.00999999977 : f32
    %88 = vector.broadcast %cst_56 : f32 to vector<8x64xf32>
    %89 = arith.mulf %88, %87 : vector<8x64xf32>
    %90 = arith.maximumf %87, %89 : vector<8x64xf32>
    %c1_57 = arith.constant 1 : index
    %c0_58 = arith.constant 0 : index
    %c0_59 = arith.constant 0 : index
    %91 = vector.load %arg8[%c1_57, %c0_58, %c0_59] : memref<8x64x16xbf16, #tpu.memory_space<vmem>>, vector<1x64x16xbf16>
    %92 = vector.shape_cast %91 : vector<1x64x16xbf16> to vector<64x16xbf16>
    %c1_60 = arith.constant 1 : index
    %c0_61 = arith.constant 0 : index
    %c0_62 = arith.constant 0 : index
    %93 = vector.load %arg9[%c1_60, %c0_61, %c0_62] : memref<8x1x16xf32, #tpu.memory_space<vmem>>, vector<1x1x16xf32>
    %94 = vector.shape_cast %93 : vector<1x1x16xf32> to vector<1x16xf32>
    %95 = arith.truncf %90 : vector<8x64xf32> to vector<8x64xbf16>
    %cst_63 = arith.constant dense<0.000000e+00> : vector<8x16xf32>
    %96 = tpu.matmul %95, %92, %cst_63 {dimension_numbers = #tpu.dot_dimension_numbers<[1], [0], [0], [1], [0, 0, 1, 1], [], []>} : vector<8x64xbf16>, vector<64x16xbf16>, vector<8x16xf32> -> vector<8x16xf32>
    %97 = vector.broadcast %94 : vector<1x16xf32> to vector<8x16xf32>
    %98 = arith.addf %96, %97 : vector<8x16xf32>
    %99 = vector.extract_strided_slice %98 {offsets = [0, 0], sizes = [8, 8], strides = [1, 1]} : vector<8x16xf32> to vector<8x8xf32>
    %100 = math.tanh %99 : vector<8x8xf32>
    %101 = vector.extract_strided_slice %98 {offsets = [0, 8], sizes = [8, 8], strides = [1, 1]} : vector<8x16xf32> to vector<8x8xf32>
    %102 = math.exp %100 : vector<8x8xf32>
    %103 = arith.mulf %11, %102 : vector<8x8xf32>
    %104 = arith.addf %103, %101 : vector<8x8xf32>
    %105 = arith.addf %57, %100 : vector<8x8xf32>
    %c0_64 = arith.constant 0 : index
    %c0_65 = arith.constant 0 : index
    %c0_66 = arith.constant 0 : index
    %106 = vector.load %arg10[%c0_64, %c0_65, %c0_66] : memref<3x8x80xbf16, #tpu.memory_space<vmem>>, vector<1x8x80xbf16>
    %107 = vector.shape_cast %106 : vector<1x8x80xbf16> to vector<8x80xbf16>
    %c0_67 = arith.constant 0 : index
    %c0_68 = arith.constant 0 : index
    %c0_69 = arith.constant 0 : index
    %108 = vector.load %arg11[%c0_67, %c0_68, %c0_69] : memref<3x8x80xbf16, #tpu.memory_space<vmem>>, vector<1x8x80xbf16>
    %109 = vector.shape_cast %108 : vector<1x8x80xbf16> to vector<8x80xbf16>
    %c0_70 = arith.constant 0 : index
    %c0_71 = arith.constant 0 : index
    %c0_72 = arith.constant 0 : index
    %110 = vector.load %arg12[%c0_70, %c0_71, %c0_72] : memref<3x1x80xf32, #tpu.memory_space<vmem>>, vector<1x1x80xf32>
    %111 = vector.shape_cast %110 : vector<1x1x80xf32> to vector<1x80xf32>
    %112 = arith.truncf %104 : vector<8x8xf32> to vector<8x8xbf16>
    %cst_73 = arith.constant dense<0.000000e+00> : vector<8x80xf32>
    %113 = tpu.matmul %112, %107, %cst_73 {dimension_numbers = #tpu.dot_dimension_numbers<[1], [0], [0], [1], [0, 0, 1, 1], [], []>} : vector<8x8xbf16>, vector<8x80xbf16>, vector<8x80xf32> -> vector<8x80xf32>
    %114 = arith.truncf %56 : vector<8x8xf32> to vector<8x8xbf16>
    %cst_74 = arith.constant dense<0.000000e+00> : vector<8x80xf32>
    %115 = tpu.matmul %114, %109, %cst_74 {dimension_numbers = #tpu.dot_dimension_numbers<[1], [0], [0], [1], [0, 0, 1, 1], [], []>} : vector<8x8xbf16>, vector<8x80xbf16>, vector<8x80xf32> -> vector<8x80xf32>
    %116 = arith.addf %113, %115 : vector<8x80xf32>
    %117 = vector.broadcast %111 : vector<1x80xf32> to vector<8x80xf32>
    %118 = arith.addf %116, %117 : vector<8x80xf32>
    %119 = vector.extract_strided_slice %118 {offsets = [0, 0], sizes = [8, 8], strides = [1, 1]} : vector<8x80xf32> to vector<8x8xf32>
    %120 = vector.extract_strided_slice %118 {offsets = [0, 8], sizes = [8, 8], strides = [1, 1]} : vector<8x80xf32> to vector<8x8xf32>
    %121 = vector.extract_strided_slice %118 {offsets = [0, 16], sizes = [8, 64], strides = [1, 1]} : vector<8x80xf32> to vector<8x64xf32>
    %cst_75 = arith.constant 0.00999999977 : f32
    %122 = vector.broadcast %cst_75 : f32 to vector<8x64xf32>
    %123 = arith.mulf %122, %121 : vector<8x64xf32>
    %124 = arith.maximumf %121, %123 : vector<8x64xf32>
    %c4 = arith.constant 4 : index
    %c0_76 = arith.constant 0 : index
    %c0_77 = arith.constant 0 : index
    %125 = vector.load %arg6[%c4, %c0_76, %c0_77] : memref<16x64x64xbf16, #tpu.memory_space<vmem>>, vector<1x64x64xbf16>
    %126 = vector.shape_cast %125 : vector<1x64x64xbf16> to vector<64x64xbf16>
    %c4_78 = arith.constant 4 : index
    %c0_79 = arith.constant 0 : index
    %c0_80 = arith.constant 0 : index
    %127 = vector.load %arg7[%c4_78, %c0_79, %c0_80] : memref<16x1x64xf32, #tpu.memory_space<vmem>>, vector<1x1x64xf32>
    %128 = vector.shape_cast %127 : vector<1x1x64xf32> to vector<1x64xf32>
    %129 = arith.truncf %124 : vector<8x64xf32> to vector<8x64xbf16>
    %cst_81 = arith.constant dense<0.000000e+00> : vector<8x64xf32>
    %130 = tpu.matmul %129, %126, %cst_81 {dimension_numbers = #tpu.dot_dimension_numbers<[1], [0], [0], [1], [0, 0, 1, 1], [], []>} : vector<8x64xbf16>, vector<64x64xbf16>, vector<8x64xf32> -> vector<8x64xf32>
    %131 = vector.broadcast %128 : vector<1x64xf32> to vector<8x64xf32>
    %132 = arith.addf %130, %131 : vector<8x64xf32>
    %cst_82 = arith.constant 0.00999999977 : f32
    %133 = vector.broadcast %cst_82 : f32 to vector<8x64xf32>
    %134 = arith.mulf %133, %132 : vector<8x64xf32>
    %135 = arith.maximumf %132, %134 : vector<8x64xf32>
    %c5 = arith.constant 5 : index
    %c0_83 = arith.constant 0 : index
    %c0_84 = arith.constant 0 : index
    %136 = vector.load %arg6[%c5, %c0_83, %c0_84] : memref<16x64x64xbf16, #tpu.memory_space<vmem>>, vector<1x64x64xbf16>
    %137 = vector.shape_cast %136 : vector<1x64x64xbf16> to vector<64x64xbf16>
    %c5_85 = arith.constant 5 : index
    %c0_86 = arith.constant 0 : index
    %c0_87 = arith.constant 0 : index
    %138 = vector.load %arg7[%c5_85, %c0_86, %c0_87] : memref<16x1x64xf32, #tpu.memory_space<vmem>>, vector<1x1x64xf32>
    %139 = vector.shape_cast %138 : vector<1x1x64xf32> to vector<1x64xf32>
    %140 = arith.truncf %135 : vector<8x64xf32> to vector<8x64xbf16>
    %cst_88 = arith.constant dense<0.000000e+00> : vector<8x64xf32>
    %141 = tpu.matmul %140, %137, %cst_88 {dimension_numbers = #tpu.dot_dimension_numbers<[1], [0], [0], [1], [0, 0, 1, 1], [], []>} : vector<8x64xbf16>, vector<64x64xbf16>, vector<8x64xf32> -> vector<8x64xf32>
    %142 = vector.broadcast %139 : vector<1x64xf32> to vector<8x64xf32>
    %143 = arith.addf %141, %142 : vector<8x64xf32>
    %cst_89 = arith.constant 0.00999999977 : f32
    %144 = vector.broadcast %cst_89 : f32 to vector<8x64xf32>
    %145 = arith.mulf %144, %143 : vector<8x64xf32>
    %146 = arith.maximumf %143, %145 : vector<8x64xf32>
    %c2_90 = arith.constant 2 : index
    %c0_91 = arith.constant 0 : index
    %c0_92 = arith.constant 0 : index
    %147 = vector.load %arg8[%c2_90, %c0_91, %c0_92] : memref<8x64x16xbf16, #tpu.memory_space<vmem>>, vector<1x64x16xbf16>
    %148 = vector.shape_cast %147 : vector<1x64x16xbf16> to vector<64x16xbf16>
    %c2_93 = arith.constant 2 : index
    %c0_94 = arith.constant 0 : index
    %c0_95 = arith.constant 0 : index
    %149 = vector.load %arg9[%c2_93, %c0_94, %c0_95] : memref<8x1x16xf32, #tpu.memory_space<vmem>>, vector<1x1x16xf32>
    %150 = vector.shape_cast %149 : vector<1x1x16xf32> to vector<1x16xf32>
    %151 = arith.truncf %146 : vector<8x64xf32> to vector<8x64xbf16>
    %cst_96 = arith.constant dense<0.000000e+00> : vector<8x16xf32>
    %152 = tpu.matmul %151, %148, %cst_96 {dimension_numbers = #tpu.dot_dimension_numbers<[1], [0], [0], [1], [0, 0, 1, 1], [], []>} : vector<8x64xbf16>, vector<64x16xbf16>, vector<8x16xf32> -> vector<8x16xf32>
    %153 = vector.broadcast %150 : vector<1x16xf32> to vector<8x16xf32>
    %154 = arith.addf %152, %153 : vector<8x16xf32>
    %155 = vector.extract_strided_slice %154 {offsets = [0, 0], sizes = [8, 8], strides = [1, 1]} : vector<8x16xf32> to vector<8x8xf32>
    %156 = math.tanh %155 : vector<8x8xf32>
    %157 = vector.extract_strided_slice %154 {offsets = [0, 8], sizes = [8, 8], strides = [1, 1]} : vector<8x16xf32> to vector<8x8xf32>
    %158 = math.exp %156 : vector<8x8xf32>
    %159 = arith.mulf %120, %158 : vector<8x8xf32>
    %160 = arith.addf %159, %157 : vector<8x8xf32>
    %161 = arith.addf %105, %156 : vector<8x8xf32>
    %c3_97 = arith.constant 3 : index
    %c0_98 = arith.constant 0 : index
    %c0_99 = arith.constant 0 : index
    %162 = vector.load %arg4[%c3_97, %c0_98, %c0_99] : memref<8x8x64xbf16, #tpu.memory_space<vmem>>, vector<1x8x64xbf16>
    %163 = vector.shape_cast %162 : vector<1x8x64xbf16> to vector<8x64xbf16>
    %c3_100 = arith.constant 3 : index
    %c0_101 = arith.constant 0 : index
    %c0_102 = arith.constant 0 : index
    %164 = vector.load %arg5[%c3_100, %c0_101, %c0_102] : memref<8x1x64xf32, #tpu.memory_space<vmem>>, vector<1x1x64xf32>
    %165 = vector.shape_cast %164 : vector<1x1x64xf32> to vector<1x64xf32>
    %166 = arith.truncf %160 : vector<8x8xf32> to vector<8x8xbf16>
    %cst_103 = arith.constant dense<0.000000e+00> : vector<8x64xf32>
    %167 = tpu.matmul %166, %163, %cst_103 {dimension_numbers = #tpu.dot_dimension_numbers<[1], [0], [0], [1], [0, 0, 1, 1], [], []>} : vector<8x8xbf16>, vector<8x64xbf16>, vector<8x64xf32> -> vector<8x64xf32>
    %168 = vector.broadcast %165 : vector<1x64xf32> to vector<8x64xf32>
    %169 = arith.addf %167, %168 : vector<8x64xf32>
    %cst_104 = arith.constant 0.00999999977 : f32
    %170 = vector.broadcast %cst_104 : f32 to vector<8x64xf32>
    %171 = arith.mulf %170, %169 : vector<8x64xf32>
    %172 = arith.maximumf %169, %171 : vector<8x64xf32>
    %c6 = arith.constant 6 : index
    %c0_105 = arith.constant 0 : index
    %c0_106 = arith.constant 0 : index
    %173 = vector.load %arg6[%c6, %c0_105, %c0_106] : memref<16x64x64xbf16, #tpu.memory_space<vmem>>, vector<1x64x64xbf16>
    %174 = vector.shape_cast %173 : vector<1x64x64xbf16> to vector<64x64xbf16>
    %c6_107 = arith.constant 6 : index
    %c0_108 = arith.constant 0 : index
    %c0_109 = arith.constant 0 : index
    %175 = vector.load %arg7[%c6_107, %c0_108, %c0_109] : memref<16x1x64xf32, #tpu.memory_space<vmem>>, vector<1x1x64xf32>
    %176 = vector.shape_cast %175 : vector<1x1x64xf32> to vector<1x64xf32>
    %177 = arith.truncf %172 : vector<8x64xf32> to vector<8x64xbf16>
    %cst_110 = arith.constant dense<0.000000e+00> : vector<8x64xf32>
    %178 = tpu.matmul %177, %174, %cst_110 {dimension_numbers = #tpu.dot_dimension_numbers<[1], [0], [0], [1], [0, 0, 1, 1], [], []>} : vector<8x64xbf16>, vector<64x64xbf16>, vector<8x64xf32> -> vector<8x64xf32>
    %179 = vector.broadcast %176 : vector<1x64xf32> to vector<8x64xf32>
    %180 = arith.addf %178, %179 : vector<8x64xf32>
    %cst_111 = arith.constant 0.00999999977 : f32
    %181 = vector.broadcast %cst_111 : f32 to vector<8x64xf32>
    %182 = arith.mulf %181, %180 : vector<8x64xf32>
    %183 = arith.maximumf %180, %182 : vector<8x64xf32>
    %c7 = arith.constant 7 : index
    %c0_112 = arith.constant 0 : index
    %c0_113 = arith.constant 0 : index
    %184 = vector.load %arg6[%c7, %c0_112, %c0_113] : memref<16x64x64xbf16, #tpu.memory_space<vmem>>, vector<1x64x64xbf16>
    %185 = vector.shape_cast %184 : vector<1x64x64xbf16> to vector<64x64xbf16>
    %c7_114 = arith.constant 7 : index
    %c0_115 = arith.constant 0 : index
    %c0_116 = arith.constant 0 : index
    %186 = vector.load %arg7[%c7_114, %c0_115, %c0_116] : memref<16x1x64xf32, #tpu.memory_space<vmem>>, vector<1x1x64xf32>
    %187 = vector.shape_cast %186 : vector<1x1x64xf32> to vector<1x64xf32>
    %188 = arith.truncf %183 : vector<8x64xf32> to vector<8x64xbf16>
    %cst_117 = arith.constant dense<0.000000e+00> : vector<8x64xf32>
    %189 = tpu.matmul %188, %185, %cst_117 {dimension_numbers = #tpu.dot_dimension_numbers<[1], [0], [0], [1], [0, 0, 1, 1], [], []>} : vector<8x64xbf16>, vector<64x64xbf16>, vector<8x64xf32> -> vector<8x64xf32>
    %190 = vector.broadcast %187 : vector<1x64xf32> to vector<8x64xf32>
    %191 = arith.addf %189, %190 : vector<8x64xf32>
    %cst_118 = arith.constant 0.00999999977 : f32
    %192 = vector.broadcast %cst_118 : f32 to vector<8x64xf32>
    %193 = arith.mulf %192, %191 : vector<8x64xf32>
    %194 = arith.maximumf %191, %193 : vector<8x64xf32>
    %c3_119 = arith.constant 3 : index
    %c0_120 = arith.constant 0 : index
    %c0_121 = arith.constant 0 : index
    %195 = vector.load %arg8[%c3_119, %c0_120, %c0_121] : memref<8x64x16xbf16, #tpu.memory_space<vmem>>, vector<1x64x16xbf16>
    %196 = vector.shape_cast %195 : vector<1x64x16xbf16> to vector<64x16xbf16>
    %c3_122 = arith.constant 3 : index
    %c0_123 = arith.constant 0 : index
    %c0_124 = arith.constant 0 : index
    %197 = vector.load %arg9[%c3_122, %c0_123, %c0_124] : memref<8x1x16xf32, #tpu.memory_space<vmem>>, vector<1x1x16xf32>
    %198 = vector.shape_cast %197 : vector<1x1x16xf32> to vector<1x16xf32>
    %199 = arith.truncf %194 : vector<8x64xf32> to vector<8x64xbf16>
    %cst_125 = arith.constant dense<0.000000e+00> : vector<8x16xf32>
    %200 = tpu.matmul %199, %196, %cst_125 {dimension_numbers = #tpu.dot_dimension_numbers<[1], [0], [0], [1], [0, 0, 1, 1], [], []>} : vector<8x64xbf16>, vector<64x16xbf16>, vector<8x16xf32> -> vector<8x16xf32>
    %201 = vector.broadcast %198 : vector<1x16xf32> to vector<8x16xf32>
    %202 = arith.addf %200, %201 : vector<8x16xf32>
    %203 = vector.extract_strided_slice %202 {offsets = [0, 0], sizes = [8, 8], strides = [1, 1]} : vector<8x16xf32> to vector<8x8xf32>
    %204 = math.tanh %203 : vector<8x8xf32>
    %205 = vector.extract_strided_slice %202 {offsets = [0, 8], sizes = [8, 8], strides = [1, 1]} : vector<8x16xf32> to vector<8x8xf32>
    %206 = math.exp %204 : vector<8x8xf32>
    %207 = arith.mulf %119, %206 : vector<8x8xf32>
    %208 = arith.addf %207, %205 : vector<8x8xf32>
    %209 = arith.addf %161, %204 : vector<8x8xf32>
    %c1_126 = arith.constant 1 : index
    %c0_127 = arith.constant 0 : index
    %c0_128 = arith.constant 0 : index
    %210 = vector.load %arg10[%c1_126, %c0_127, %c0_128] : memref<3x8x80xbf16, #tpu.memory_space<vmem>>, vector<1x8x80xbf16>
    %211 = vector.shape_cast %210 : vector<1x8x80xbf16> to vector<8x80xbf16>
    %c1_129 = arith.constant 1 : index
    %c0_130 = arith.constant 0 : index
    %c0_131 = arith.constant 0 : index
    %212 = vector.load %arg11[%c1_129, %c0_130, %c0_131] : memref<3x8x80xbf16, #tpu.memory_space<vmem>>, vector<1x8x80xbf16>
    %213 = vector.shape_cast %212 : vector<1x8x80xbf16> to vector<8x80xbf16>
    %c1_132 = arith.constant 1 : index
    %c0_133 = arith.constant 0 : index
    %c0_134 = arith.constant 0 : index
    %214 = vector.load %arg12[%c1_132, %c0_133, %c0_134] : memref<3x1x80xf32, #tpu.memory_space<vmem>>, vector<1x1x80xf32>
    %215 = vector.shape_cast %214 : vector<1x1x80xf32> to vector<1x80xf32>
    %216 = arith.truncf %208 : vector<8x8xf32> to vector<8x8xbf16>
    %cst_135 = arith.constant dense<0.000000e+00> : vector<8x80xf32>
    %217 = tpu.matmul %216, %211, %cst_135 {dimension_numbers = #tpu.dot_dimension_numbers<[1], [0], [0], [1], [0, 0, 1, 1], [], []>} : vector<8x8xbf16>, vector<8x80xbf16>, vector<8x80xf32> -> vector<8x80xf32>
    %218 = arith.truncf %160 : vector<8x8xf32> to vector<8x8xbf16>
    %cst_136 = arith.constant dense<0.000000e+00> : vector<8x80xf32>
    %219 = tpu.matmul %218, %213, %cst_136 {dimension_numbers = #tpu.dot_dimension_numbers<[1], [0], [0], [1], [0, 0, 1, 1], [], []>} : vector<8x8xbf16>, vector<8x80xbf16>, vector<8x80xf32> -> vector<8x80xf32>
    %220 = arith.addf %217, %219 : vector<8x80xf32>
    %221 = vector.broadcast %215 : vector<1x80xf32> to vector<8x80xf32>
    %222 = arith.addf %220, %221 : vector<8x80xf32>
    %223 = vector.extract_strided_slice %222 {offsets = [0, 0], sizes = [8, 8], strides = [1, 1]} : vector<8x80xf32> to vector<8x8xf32>
    %224 = vector.extract_strided_slice %222 {offsets = [0, 8], sizes = [8, 8], strides = [1, 1]} : vector<8x80xf32> to vector<8x8xf32>
    %225 = vector.extract_strided_slice %222 {offsets = [0, 16], sizes = [8, 64], strides = [1, 1]} : vector<8x80xf32> to vector<8x64xf32>
    %cst_137 = arith.constant 0.00999999977 : f32
    %226 = vector.broadcast %cst_137 : f32 to vector<8x64xf32>
    %227 = arith.mulf %226, %225 : vector<8x64xf32>
    %228 = arith.maximumf %225, %227 : vector<8x64xf32>
    %c8 = arith.constant 8 : index
    %c0_138 = arith.constant 0 : index
    %c0_139 = arith.constant 0 : index
    %229 = vector.load %arg6[%c8, %c0_138, %c0_139] : memref<16x64x64xbf16, #tpu.memory_space<vmem>>, vector<1x64x64xbf16>
    %230 = vector.shape_cast %229 : vector<1x64x64xbf16> to vector<64x64xbf16>
    %c8_140 = arith.constant 8 : index
    %c0_141 = arith.constant 0 : index
    %c0_142 = arith.constant 0 : index
    %231 = vector.load %arg7[%c8_140, %c0_141, %c0_142] : memref<16x1x64xf32, #tpu.memory_space<vmem>>, vector<1x1x64xf32>
    %232 = vector.shape_cast %231 : vector<1x1x64xf32> to vector<1x64xf32>
    %233 = arith.truncf %228 : vector<8x64xf32> to vector<8x64xbf16>
    %cst_143 = arith.constant dense<0.000000e+00> : vector<8x64xf32>
    %234 = tpu.matmul %233, %230, %cst_143 {dimension_numbers = #tpu.dot_dimension_numbers<[1], [0], [0], [1], [0, 0, 1, 1], [], []>} : vector<8x64xbf16>, vector<64x64xbf16>, vector<8x64xf32> -> vector<8x64xf32>
    %235 = vector.broadcast %232 : vector<1x64xf32> to vector<8x64xf32>
    %236 = arith.addf %234, %235 : vector<8x64xf32>
    %cst_144 = arith.constant 0.00999999977 : f32
    %237 = vector.broadcast %cst_144 : f32 to vector<8x64xf32>
    %238 = arith.mulf %237, %236 : vector<8x64xf32>
    %239 = arith.maximumf %236, %238 : vector<8x64xf32>
    %c9 = arith.constant 9 : index
    %c0_145 = arith.constant 0 : index
    %c0_146 = arith.constant 0 : index
    %240 = vector.load %arg6[%c9, %c0_145, %c0_146] : memref<16x64x64xbf16, #tpu.memory_space<vmem>>, vector<1x64x64xbf16>
    %241 = vector.shape_cast %240 : vector<1x64x64xbf16> to vector<64x64xbf16>
    %c9_147 = arith.constant 9 : index
    %c0_148 = arith.constant 0 : index
    %c0_149 = arith.constant 0 : index
    %242 = vector.load %arg7[%c9_147, %c0_148, %c0_149] : memref<16x1x64xf32, #tpu.memory_space<vmem>>, vector<1x1x64xf32>
    %243 = vector.shape_cast %242 : vector<1x1x64xf32> to vector<1x64xf32>
    %244 = arith.truncf %239 : vector<8x64xf32> to vector<8x64xbf16>
    %cst_150 = arith.constant dense<0.000000e+00> : vector<8x64xf32>
    %245 = tpu.matmul %244, %241, %cst_150 {dimension_numbers = #tpu.dot_dimension_numbers<[1], [0], [0], [1], [0, 0, 1, 1], [], []>} : vector<8x64xbf16>, vector<64x64xbf16>, vector<8x64xf32> -> vector<8x64xf32>
    %246 = vector.broadcast %243 : vector<1x64xf32> to vector<8x64xf32>
    %247 = arith.addf %245, %246 : vector<8x64xf32>
    %cst_151 = arith.constant 0.00999999977 : f32
    %248 = vector.broadcast %cst_151 : f32 to vector<8x64xf32>
    %249 = arith.mulf %248, %247 : vector<8x64xf32>
    %250 = arith.maximumf %247, %249 : vector<8x64xf32>
    %c4_152 = arith.constant 4 : index
    %c0_153 = arith.constant 0 : index
    %c0_154 = arith.constant 0 : index
    %251 = vector.load %arg8[%c4_152, %c0_153, %c0_154] : memref<8x64x16xbf16, #tpu.memory_space<vmem>>, vector<1x64x16xbf16>
    %252 = vector.shape_cast %251 : vector<1x64x16xbf16> to vector<64x16xbf16>
    %c4_155 = arith.constant 4 : index
    %c0_156 = arith.constant 0 : index
    %c0_157 = arith.constant 0 : index
    %253 = vector.load %arg9[%c4_155, %c0_156, %c0_157] : memref<8x1x16xf32, #tpu.memory_space<vmem>>, vector<1x1x16xf32>
    %254 = vector.shape_cast %253 : vector<1x1x16xf32> to vector<1x16xf32>
    %255 = arith.truncf %250 : vector<8x64xf32> to vector<8x64xbf16>
    %cst_158 = arith.constant dense<0.000000e+00> : vector<8x16xf32>
    %256 = tpu.matmul %255, %252, %cst_158 {dimension_numbers = #tpu.dot_dimension_numbers<[1], [0], [0], [1], [0, 0, 1, 1], [], []>} : vector<8x64xbf16>, vector<64x16xbf16>, vector<8x16xf32> -> vector<8x16xf32>
    %257 = vector.broadcast %254 : vector<1x16xf32> to vector<8x16xf32>
    %258 = arith.addf %256, %257 : vector<8x16xf32>
    %259 = vector.extract_strided_slice %258 {offsets = [0, 0], sizes = [8, 8], strides = [1, 1]} : vector<8x16xf32> to vector<8x8xf32>
    %260 = math.tanh %259 : vector<8x8xf32>
    %261 = vector.extract_strided_slice %258 {offsets = [0, 8], sizes = [8, 8], strides = [1, 1]} : vector<8x16xf32> to vector<8x8xf32>
    %262 = math.exp %260 : vector<8x8xf32>
    %263 = arith.mulf %224, %262 : vector<8x8xf32>
    %264 = arith.addf %263, %261 : vector<8x8xf32>
    %265 = arith.addf %209, %260 : vector<8x8xf32>
    %c5_159 = arith.constant 5 : index
    %c0_160 = arith.constant 0 : index
    %c0_161 = arith.constant 0 : index
    %266 = vector.load %arg4[%c5_159, %c0_160, %c0_161] : memref<8x8x64xbf16, #tpu.memory_space<vmem>>, vector<1x8x64xbf16>
    %267 = vector.shape_cast %266 : vector<1x8x64xbf16> to vector<8x64xbf16>
    %c5_162 = arith.constant 5 : index
    %c0_163 = arith.constant 0 : index
    %c0_164 = arith.constant 0 : index
    %268 = vector.load %arg5[%c5_162, %c0_163, %c0_164] : memref<8x1x64xf32, #tpu.memory_space<vmem>>, vector<1x1x64xf32>
    %269 = vector.shape_cast %268 : vector<1x1x64xf32> to vector<1x64xf32>
    %270 = arith.truncf %264 : vector<8x8xf32> to vector<8x8xbf16>
    %cst_165 = arith.constant dense<0.000000e+00> : vector<8x64xf32>
    %271 = tpu.matmul %270, %267, %cst_165 {dimension_numbers = #tpu.dot_dimension_numbers<[1], [0], [0], [1], [0, 0, 1, 1], [], []>} : vector<8x8xbf16>, vector<8x64xbf16>, vector<8x64xf32> -> vector<8x64xf32>
    %272 = vector.broadcast %269 : vector<1x64xf32> to vector<8x64xf32>
    %273 = arith.addf %271, %272 : vector<8x64xf32>
    %cst_166 = arith.constant 0.00999999977 : f32
    %274 = vector.broadcast %cst_166 : f32 to vector<8x64xf32>
    %275 = arith.mulf %274, %273 : vector<8x64xf32>
    %276 = arith.maximumf %273, %275 : vector<8x64xf32>
    %c10 = arith.constant 10 : index
    %c0_167 = arith.constant 0 : index
    %c0_168 = arith.constant 0 : index
    %277 = vector.load %arg6[%c10, %c0_167, %c0_168] : memref<16x64x64xbf16, #tpu.memory_space<vmem>>, vector<1x64x64xbf16>
    %278 = vector.shape_cast %277 : vector<1x64x64xbf16> to vector<64x64xbf16>
    %c10_169 = arith.constant 10 : index
    %c0_170 = arith.constant 0 : index
    %c0_171 = arith.constant 0 : index
    %279 = vector.load %arg7[%c10_169, %c0_170, %c0_171] : memref<16x1x64xf32, #tpu.memory_space<vmem>>, vector<1x1x64xf32>
    %280 = vector.shape_cast %279 : vector<1x1x64xf32> to vector<1x64xf32>
    %281 = arith.truncf %276 : vector<8x64xf32> to vector<8x64xbf16>
    %cst_172 = arith.constant dense<0.000000e+00> : vector<8x64xf32>
    %282 = tpu.matmul %281, %278, %cst_172 {dimension_numbers = #tpu.dot_dimension_numbers<[1], [0], [0], [1], [0, 0, 1, 1], [], []>} : vector<8x64xbf16>, vector<64x64xbf16>, vector<8x64xf32> -> vector<8x64xf32>
    %283 = vector.broadcast %280 : vector<1x64xf32> to vector<8x64xf32>
    %284 = arith.addf %282, %283 : vector<8x64xf32>
    %cst_173 = arith.constant 0.00999999977 : f32
    %285 = vector.broadcast %cst_173 : f32 to vector<8x64xf32>
    %286 = arith.mulf %285, %284 : vector<8x64xf32>
    %287 = arith.maximumf %284, %286 : vector<8x64xf32>
    %c11 = arith.constant 11 : index
    %c0_174 = arith.constant 0 : index
    %c0_175 = arith.constant 0 : index
    %288 = vector.load %arg6[%c11, %c0_174, %c0_175] : memref<16x64x64xbf16, #tpu.memory_space<vmem>>, vector<1x64x64xbf16>
    %289 = vector.shape_cast %288 : vector<1x64x64xbf16> to vector<64x64xbf16>
    %c11_176 = arith.constant 11 : index
    %c0_177 = arith.constant 0 : index
    %c0_178 = arith.constant 0 : index
    %290 = vector.load %arg7[%c11_176, %c0_177, %c0_178] : memref<16x1x64xf32, #tpu.memory_space<vmem>>, vector<1x1x64xf32>
    %291 = vector.shape_cast %290 : vector<1x1x64xf32> to vector<1x64xf32>
    %292 = arith.truncf %287 : vector<8x64xf32> to vector<8x64xbf16>
    %cst_179 = arith.constant dense<0.000000e+00> : vector<8x64xf32>
    %293 = tpu.matmul %292, %289, %cst_179 {dimension_numbers = #tpu.dot_dimension_numbers<[1], [0], [0], [1], [0, 0, 1, 1], [], []>} : vector<8x64xbf16>, vector<64x64xbf16>, vector<8x64xf32> -> vector<8x64xf32>
    %294 = vector.broadcast %291 : vector<1x64xf32> to vector<8x64xf32>
    %295 = arith.addf %293, %294 : vector<8x64xf32>
    %cst_180 = arith.constant 0.00999999977 : f32
    %296 = vector.broadcast %cst_180 : f32 to vector<8x64xf32>
    %297 = arith.mulf %296, %295 : vector<8x64xf32>
    %298 = arith.maximumf %295, %297 : vector<8x64xf32>
    %c5_181 = arith.constant 5 : index
    %c0_182 = arith.constant 0 : index
    %c0_183 = arith.constant 0 : index
    %299 = vector.load %arg8[%c5_181, %c0_182, %c0_183] : memref<8x64x16xbf16, #tpu.memory_space<vmem>>, vector<1x64x16xbf16>
    %300 = vector.shape_cast %299 : vector<1x64x16xbf16> to vector<64x16xbf16>
    %c5_184 = arith.constant 5 : index
    %c0_185 = arith.constant 0 : index
    %c0_186 = arith.constant 0 : index
    %301 = vector.load %arg9[%c5_184, %c0_185, %c0_186] : memref<8x1x16xf32, #tpu.memory_space<vmem>>, vector<1x1x16xf32>
    %302 = vector.shape_cast %301 : vector<1x1x16xf32> to vector<1x16xf32>
    %303 = arith.truncf %298 : vector<8x64xf32> to vector<8x64xbf16>
    %cst_187 = arith.constant dense<0.000000e+00> : vector<8x16xf32>
    %304 = tpu.matmul %303, %300, %cst_187 {dimension_numbers = #tpu.dot_dimension_numbers<[1], [0], [0], [1], [0, 0, 1, 1], [], []>} : vector<8x64xbf16>, vector<64x16xbf16>, vector<8x16xf32> -> vector<8x16xf32>
    %305 = vector.broadcast %302 : vector<1x16xf32> to vector<8x16xf32>
    %306 = arith.addf %304, %305 : vector<8x16xf32>
    %307 = vector.extract_strided_slice %306 {offsets = [0, 0], sizes = [8, 8], strides = [1, 1]} : vector<8x16xf32> to vector<8x8xf32>
    %308 = math.tanh %307 : vector<8x8xf32>
    %309 = vector.extract_strided_slice %306 {offsets = [0, 8], sizes = [8, 8], strides = [1, 1]} : vector<8x16xf32> to vector<8x8xf32>
    %310 = math.exp %308 : vector<8x8xf32>
    %311 = arith.mulf %223, %310 : vector<8x8xf32>
    %312 = arith.addf %311, %309 : vector<8x8xf32>
    %313 = arith.addf %265, %308 : vector<8x8xf32>
    %c2_188 = arith.constant 2 : index
    %c0_189 = arith.constant 0 : index
    %c0_190 = arith.constant 0 : index
    %314 = vector.load %arg10[%c2_188, %c0_189, %c0_190] : memref<3x8x80xbf16, #tpu.memory_space<vmem>>, vector<1x8x80xbf16>
    %315 = vector.shape_cast %314 : vector<1x8x80xbf16> to vector<8x80xbf16>
    %c2_191 = arith.constant 2 : index
    %c0_192 = arith.constant 0 : index
    %c0_193 = arith.constant 0 : index
    %316 = vector.load %arg11[%c2_191, %c0_192, %c0_193] : memref<3x8x80xbf16, #tpu.memory_space<vmem>>, vector<1x8x80xbf16>
    %317 = vector.shape_cast %316 : vector<1x8x80xbf16> to vector<8x80xbf16>
    %c2_194 = arith.constant 2 : index
    %c0_195 = arith.constant 0 : index
    %c0_196 = arith.constant 0 : index
    %318 = vector.load %arg12[%c2_194, %c0_195, %c0_196] : memref<3x1x80xf32, #tpu.memory_space<vmem>>, vector<1x1x80xf32>
    %319 = vector.shape_cast %318 : vector<1x1x80xf32> to vector<1x80xf32>
    %320 = arith.truncf %312 : vector<8x8xf32> to vector<8x8xbf16>
    %cst_197 = arith.constant dense<0.000000e+00> : vector<8x80xf32>
    %321 = tpu.matmul %320, %315, %cst_197 {dimension_numbers = #tpu.dot_dimension_numbers<[1], [0], [0], [1], [0, 0, 1, 1], [], []>} : vector<8x8xbf16>, vector<8x80xbf16>, vector<8x80xf32> -> vector<8x80xf32>
    %322 = arith.truncf %264 : vector<8x8xf32> to vector<8x8xbf16>
    %cst_198 = arith.constant dense<0.000000e+00> : vector<8x80xf32>
    %323 = tpu.matmul %322, %317, %cst_198 {dimension_numbers = #tpu.dot_dimension_numbers<[1], [0], [0], [1], [0, 0, 1, 1], [], []>} : vector<8x8xbf16>, vector<8x80xbf16>, vector<8x80xf32> -> vector<8x80xf32>
    %324 = arith.addf %321, %323 : vector<8x80xf32>
    %325 = vector.broadcast %319 : vector<1x80xf32> to vector<8x80xf32>
    %326 = arith.addf %324, %325 : vector<8x80xf32>
    %327 = vector.extract_strided_slice %326 {offsets = [0, 0], sizes = [8, 8], strides = [1, 1]} : vector<8x80xf32> to vector<8x8xf32>
    %328 = vector.extract_strided_slice %326 {offsets = [0, 8], sizes = [8, 8], strides = [1, 1]} : vector<8x80xf32> to vector<8x8xf32>
    %329 = vector.extract_strided_slice %326 {offsets = [0, 16], sizes = [8, 64], strides = [1, 1]} : vector<8x80xf32> to vector<8x64xf32>
    %cst_199 = arith.constant 0.00999999977 : f32
    %330 = vector.broadcast %cst_199 : f32 to vector<8x64xf32>
    %331 = arith.mulf %330, %329 : vector<8x64xf32>
    %332 = arith.maximumf %329, %331 : vector<8x64xf32>
    %c12 = arith.constant 12 : index
    %c0_200 = arith.constant 0 : index
    %c0_201 = arith.constant 0 : index
    %333 = vector.load %arg6[%c12, %c0_200, %c0_201] : memref<16x64x64xbf16, #tpu.memory_space<vmem>>, vector<1x64x64xbf16>
    %334 = vector.shape_cast %333 : vector<1x64x64xbf16> to vector<64x64xbf16>
    %c12_202 = arith.constant 12 : index
    %c0_203 = arith.constant 0 : index
    %c0_204 = arith.constant 0 : index
    %335 = vector.load %arg7[%c12_202, %c0_203, %c0_204] : memref<16x1x64xf32, #tpu.memory_space<vmem>>, vector<1x1x64xf32>
    %336 = vector.shape_cast %335 : vector<1x1x64xf32> to vector<1x64xf32>
    %337 = arith.truncf %332 : vector<8x64xf32> to vector<8x64xbf16>
    %cst_205 = arith.constant dense<0.000000e+00> : vector<8x64xf32>
    %338 = tpu.matmul %337, %334, %cst_205 {dimension_numbers = #tpu.dot_dimension_numbers<[1], [0], [0], [1], [0, 0, 1, 1], [], []>} : vector<8x64xbf16>, vector<64x64xbf16>, vector<8x64xf32> -> vector<8x64xf32>
    %339 = vector.broadcast %336 : vector<1x64xf32> to vector<8x64xf32>
    %340 = arith.addf %338, %339 : vector<8x64xf32>
    %cst_206 = arith.constant 0.00999999977 : f32
    %341 = vector.broadcast %cst_206 : f32 to vector<8x64xf32>
    %342 = arith.mulf %341, %340 : vector<8x64xf32>
    %343 = arith.maximumf %340, %342 : vector<8x64xf32>
    %c13 = arith.constant 13 : index
    %c0_207 = arith.constant 0 : index
    %c0_208 = arith.constant 0 : index
    %344 = vector.load %arg6[%c13, %c0_207, %c0_208] : memref<16x64x64xbf16, #tpu.memory_space<vmem>>, vector<1x64x64xbf16>
    %345 = vector.shape_cast %344 : vector<1x64x64xbf16> to vector<64x64xbf16>
    %c13_209 = arith.constant 13 : index
    %c0_210 = arith.constant 0 : index
    %c0_211 = arith.constant 0 : index
    %346 = vector.load %arg7[%c13_209, %c0_210, %c0_211] : memref<16x1x64xf32, #tpu.memory_space<vmem>>, vector<1x1x64xf32>
    %347 = vector.shape_cast %346 : vector<1x1x64xf32> to vector<1x64xf32>
    %348 = arith.truncf %343 : vector<8x64xf32> to vector<8x64xbf16>
    %cst_212 = arith.constant dense<0.000000e+00> : vector<8x64xf32>
    %349 = tpu.matmul %348, %345, %cst_212 {dimension_numbers = #tpu.dot_dimension_numbers<[1], [0], [0], [1], [0, 0, 1, 1], [], []>} : vector<8x64xbf16>, vector<64x64xbf16>, vector<8x64xf32> -> vector<8x64xf32>
    %350 = vector.broadcast %347 : vector<1x64xf32> to vector<8x64xf32>
    %351 = arith.addf %349, %350 : vector<8x64xf32>
    %cst_213 = arith.constant 0.00999999977 : f32
    %352 = vector.broadcast %cst_213 : f32 to vector<8x64xf32>
    %353 = arith.mulf %352, %351 : vector<8x64xf32>
    %354 = arith.maximumf %351, %353 : vector<8x64xf32>
    %c6_214 = arith.constant 6 : index
    %c0_215 = arith.constant 0 : index
    %c0_216 = arith.constant 0 : index
    %355 = vector.load %arg8[%c6_214, %c0_215, %c0_216] : memref<8x64x16xbf16, #tpu.memory_space<vmem>>, vector<1x64x16xbf16>
    %356 = vector.shape_cast %355 : vector<1x64x16xbf16> to vector<64x16xbf16>
    %c6_217 = arith.constant 6 : index
    %c0_218 = arith.constant 0 : index
    %c0_219 = arith.constant 0 : index
    %357 = vector.load %arg9[%c6_217, %c0_218, %c0_219] : memref<8x1x16xf32, #tpu.memory_space<vmem>>, vector<1x1x16xf32>
    %358 = vector.shape_cast %357 : vector<1x1x16xf32> to vector<1x16xf32>
    %359 = arith.truncf %354 : vector<8x64xf32> to vector<8x64xbf16>
    %cst_220 = arith.constant dense<0.000000e+00> : vector<8x16xf32>
    %360 = tpu.matmul %359, %356, %cst_220 {dimension_numbers = #tpu.dot_dimension_numbers<[1], [0], [0], [1], [0, 0, 1, 1], [], []>} : vector<8x64xbf16>, vector<64x16xbf16>, vector<8x16xf32> -> vector<8x16xf32>
    %361 = vector.broadcast %358 : vector<1x16xf32> to vector<8x16xf32>
    %362 = arith.addf %360, %361 : vector<8x16xf32>
    %363 = vector.extract_strided_slice %362 {offsets = [0, 0], sizes = [8, 8], strides = [1, 1]} : vector<8x16xf32> to vector<8x8xf32>
    %364 = math.tanh %363 : vector<8x8xf32>
    %365 = vector.extract_strided_slice %362 {offsets = [0, 8], sizes = [8, 8], strides = [1, 1]} : vector<8x16xf32> to vector<8x8xf32>
    %366 = math.exp %364 : vector<8x8xf32>
    %367 = arith.mulf %328, %366 : vector<8x8xf32>
    %368 = arith.addf %367, %365 : vector<8x8xf32>
    %369 = arith.addf %313, %364 : vector<8x8xf32>
    %c7_221 = arith.constant 7 : index
    %c0_222 = arith.constant 0 : index
    %c0_223 = arith.constant 0 : index
    %370 = vector.load %arg4[%c7_221, %c0_222, %c0_223] : memref<8x8x64xbf16, #tpu.memory_space<vmem>>, vector<1x8x64xbf16>
    %371 = vector.shape_cast %370 : vector<1x8x64xbf16> to vector<8x64xbf16>
    %c7_224 = arith.constant 7 : index
    %c0_225 = arith.constant 0 : index
    %c0_226 = arith.constant 0 : index
    %372 = vector.load %arg5[%c7_224, %c0_225, %c0_226] : memref<8x1x64xf32, #tpu.memory_space<vmem>>, vector<1x1x64xf32>
    %373 = vector.shape_cast %372 : vector<1x1x64xf32> to vector<1x64xf32>
    %374 = arith.truncf %368 : vector<8x8xf32> to vector<8x8xbf16>
    %cst_227 = arith.constant dense<0.000000e+00> : vector<8x64xf32>
    %375 = tpu.matmul %374, %371, %cst_227 {dimension_numbers = #tpu.dot_dimension_numbers<[1], [0], [0], [1], [0, 0, 1, 1], [], []>} : vector<8x8xbf16>, vector<8x64xbf16>, vector<8x64xf32> -> vector<8x64xf32>
    %376 = vector.broadcast %373 : vector<1x64xf32> to vector<8x64xf32>
    %377 = arith.addf %375, %376 : vector<8x64xf32>
    %cst_228 = arith.constant 0.00999999977 : f32
    %378 = vector.broadcast %cst_228 : f32 to vector<8x64xf32>
    %379 = arith.mulf %378, %377 : vector<8x64xf32>
    %380 = arith.maximumf %377, %379 : vector<8x64xf32>
    %c14 = arith.constant 14 : index
    %c0_229 = arith.constant 0 : index
    %c0_230 = arith.constant 0 : index
    %381 = vector.load %arg6[%c14, %c0_229, %c0_230] : memref<16x64x64xbf16, #tpu.memory_space<vmem>>, vector<1x64x64xbf16>
    %382 = vector.shape_cast %381 : vector<1x64x64xbf16> to vector<64x64xbf16>
    %c14_231 = arith.constant 14 : index
    %c0_232 = arith.constant 0 : index
    %c0_233 = arith.constant 0 : index
    %383 = vector.load %arg7[%c14_231, %c0_232, %c0_233] : memref<16x1x64xf32, #tpu.memory_space<vmem>>, vector<1x1x64xf32>
    %384 = vector.shape_cast %383 : vector<1x1x64xf32> to vector<1x64xf32>
    %385 = arith.truncf %380 : vector<8x64xf32> to vector<8x64xbf16>
    %cst_234 = arith.constant dense<0.000000e+00> : vector<8x64xf32>
    %386 = tpu.matmul %385, %382, %cst_234 {dimension_numbers = #tpu.dot_dimension_numbers<[1], [0], [0], [1], [0, 0, 1, 1], [], []>} : vector<8x64xbf16>, vector<64x64xbf16>, vector<8x64xf32> -> vector<8x64xf32>
    %387 = vector.broadcast %384 : vector<1x64xf32> to vector<8x64xf32>
    %388 = arith.addf %386, %387 : vector<8x64xf32>
    %cst_235 = arith.constant 0.00999999977 : f32
    %389 = vector.broadcast %cst_235 : f32 to vector<8x64xf32>
    %390 = arith.mulf %389, %388 : vector<8x64xf32>
    %391 = arith.maximumf %388, %390 : vector<8x64xf32>
    %c15 = arith.constant 15 : index
    %c0_236 = arith.constant 0 : index
    %c0_237 = arith.constant 0 : index
    %392 = vector.load %arg6[%c15, %c0_236, %c0_237] : memref<16x64x64xbf16, #tpu.memory_space<vmem>>, vector<1x64x64xbf16>
    %393 = vector.shape_cast %392 : vector<1x64x64xbf16> to vector<64x64xbf16>
    %c15_238 = arith.constant 15 : index
    %c0_239 = arith.constant 0 : index
    %c0_240 = arith.constant 0 : index
    %394 = vector.load %arg7[%c15_238, %c0_239, %c0_240] : memref<16x1x64xf32, #tpu.memory_space<vmem>>, vector<1x1x64xf32>
    %395 = vector.shape_cast %394 : vector<1x1x64xf32> to vector<1x64xf32>
    %396 = arith.truncf %391 : vector<8x64xf32> to vector<8x64xbf16>
    %cst_241 = arith.constant dense<0.000000e+00> : vector<8x64xf32>
    %397 = tpu.matmul %396, %393, %cst_241 {dimension_numbers = #tpu.dot_dimension_numbers<[1], [0], [0], [1], [0, 0, 1, 1], [], []>} : vector<8x64xbf16>, vector<64x64xbf16>, vector<8x64xf32> -> vector<8x64xf32>
    %398 = vector.broadcast %395 : vector<1x64xf32> to vector<8x64xf32>
    %399 = arith.addf %397, %398 : vector<8x64xf32>
    %cst_242 = arith.constant 0.00999999977 : f32
    %400 = vector.broadcast %cst_242 : f32 to vector<8x64xf32>
    %401 = arith.mulf %400, %399 : vector<8x64xf32>
    %402 = arith.maximumf %399, %401 : vector<8x64xf32>
    %c7_243 = arith.constant 7 : index
    %c0_244 = arith.constant 0 : index
    %c0_245 = arith.constant 0 : index
    %403 = vector.load %arg8[%c7_243, %c0_244, %c0_245] : memref<8x64x16xbf16, #tpu.memory_space<vmem>>, vector<1x64x16xbf16>
    %404 = vector.shape_cast %403 : vector<1x64x16xbf16> to vector<64x16xbf16>
    %c7_246 = arith.constant 7 : index
    %c0_247 = arith.constant 0 : index
    %c0_248 = arith.constant 0 : index
    %405 = vector.load %arg9[%c7_246, %c0_247, %c0_248] : memref<8x1x16xf32, #tpu.memory_space<vmem>>, vector<1x1x16xf32>
    %406 = vector.shape_cast %405 : vector<1x1x16xf32> to vector<1x16xf32>
    %407 = arith.truncf %402 : vector<8x64xf32> to vector<8x64xbf16>
    %cst_249 = arith.constant dense<0.000000e+00> : vector<8x16xf32>
    %408 = tpu.matmul %407, %404, %cst_249 {dimension_numbers = #tpu.dot_dimension_numbers<[1], [0], [0], [1], [0, 0, 1, 1], [], []>} : vector<8x64xbf16>, vector<64x16xbf16>, vector<8x16xf32> -> vector<8x16xf32>
    %409 = vector.broadcast %406 : vector<1x16xf32> to vector<8x16xf32>
    %410 = arith.addf %408, %409 : vector<8x16xf32>
    %411 = vector.extract_strided_slice %410 {offsets = [0, 0], sizes = [8, 8], strides = [1, 1]} : vector<8x16xf32> to vector<8x8xf32>
    %412 = math.tanh %411 : vector<8x8xf32>
    %413 = vector.extract_strided_slice %410 {offsets = [0, 8], sizes = [8, 8], strides = [1, 1]} : vector<8x16xf32> to vector<8x8xf32>
    %414 = math.exp %412 : vector<8x8xf32>
    %415 = arith.mulf %327, %414 : vector<8x8xf32>
    %416 = arith.addf %415, %413 : vector<8x8xf32>
    %417 = arith.addf %369, %412 : vector<8x8xf32>
    %c0_250 = arith.constant 0 : index
    %c0_251 = arith.constant 0 : index
    %418 = vector.load %arg13[%c0_250, %c0_251] : memref<8x16xbf16, #tpu.memory_space<vmem>>, vector<8x16xbf16>
    %c0_252 = arith.constant 0 : index
    %c0_253 = arith.constant 0 : index
    %419 = vector.load %arg14[%c0_252, %c0_253] : memref<8x16xbf16, #tpu.memory_space<vmem>>, vector<8x16xbf16>
    %c0_254 = arith.constant 0 : index
    %c0_255 = arith.constant 0 : index
    %420 = vector.load %arg15[%c0_254, %c0_255] : memref<1x16xf32, #tpu.memory_space<vmem>>, vector<1x16xf32>
    %421 = arith.truncf %416 : vector<8x8xf32> to vector<8x8xbf16>
    %cst_256 = arith.constant dense<0.000000e+00> : vector<8x16xf32>
    %422 = tpu.matmul %421, %418, %cst_256 {dimension_numbers = #tpu.dot_dimension_numbers<[1], [0], [0], [1], [0, 0, 1, 1], [], []>} : vector<8x8xbf16>, vector<8x16xbf16>, vector<8x16xf32> -> vector<8x16xf32>
    %423 = arith.truncf %368 : vector<8x8xf32> to vector<8x8xbf16>
    %cst_257 = arith.constant dense<0.000000e+00> : vector<8x16xf32>
    %424 = tpu.matmul %423, %419, %cst_257 {dimension_numbers = #tpu.dot_dimension_numbers<[1], [0], [0], [1], [0, 0, 1, 1], [], []>} : vector<8x8xbf16>, vector<8x16xbf16>, vector<8x16xf32> -> vector<8x16xf32>
    %425 = arith.addf %422, %424 : vector<8x16xf32>
    %426 = vector.broadcast %420 : vector<1x16xf32> to vector<8x16xf32>
    %427 = arith.addf %425, %426 : vector<8x16xf32>
    %c0_258 = arith.constant 0 : index
    %c0_259 = arith.constant 0 : index
    %428 = vector.load %arg16[%c0_258, %c0_259] : memref<8x16xf32, #tpu.memory_space<vmem>>, vector<8x16xf32>
    tpu.vector_store %arg16[%c0_258, %c0_259], %427 {strides = array<i32>} : memref<8x16xf32, #tpu.memory_space<vmem>>, vector<8x16xf32>,
    %cst_260 = arith.constant dense<0.000000e+00> : vector<8xf32>
    %429 = vector.multi_reduction <add>, %417, %cst_260 [1] : vector<8x8xf32> to vector<8xf32>
    %430 = vector.shape_cast %429 : vector<8xf32> to vector<8x1xf32>
    %c0_261 = arith.constant 0 : index
    %c0_262 = arith.constant 0 : index
    %431 = vector.load %arg17[%c0_261, %c0_262] : memref<8x1xf32, #tpu.memory_space<vmem>>, vector<8x1xf32>
    tpu.vector_store %arg17[%c0_261, %c0_262], %430 {strides = array<i32>} : memref<8x1xf32, #tpu.memory_space<vmem>>, vector<8x1xf32>,
    return
  }
  func.func @transform_0(%arg0: i32) -> (i32, i32) {
    %c0_i32 = arith.constant 0 : i32
    %c0_i32_0 = arith.constant 0 : i32
    return %arg0, %c0_i32 : i32, i32
  }
  func.func @transform_1(%arg0: i32) -> (i32, i32) {
    %c0_i32 = arith.constant 0 : i32
    %c0_i32_0 = arith.constant 0 : i32
    %c0_i32_1 = arith.constant 0 : i32
    return %c0_i32, %c0_i32_0 : i32, i32
  }
  func.func @transform_2(%arg0: i32) -> (i32, i32) {
    %c0_i32 = arith.constant 0 : i32
    %c0_i32_0 = arith.constant 0 : i32
    %c0_i32_1 = arith.constant 0 : i32
    return %c0_i32, %c0_i32_0 : i32, i32
  }
  func.func @transform_3(%arg0: i32) -> (i32, i32, i32) {
    %c0_i32 = arith.constant 0 : i32
    %c0_i32_0 = arith.constant 0 : i32
    %c0_i32_1 = arith.constant 0 : i32
    %c0_i32_2 = arith.constant 0 : i32
    return %c0_i32, %c0_i32_0, %c0_i32_1 : i32, i32, i32
  }
  func.func @transform_4(%arg0: i32) -> (i32, i32, i32) {
    %c0_i32 = arith.constant 0 : i32
    %c0_i32_0 = arith.constant 0 : i32
    %c0_i32_1 = arith.constant 0 : i32
    %c0_i32_2 = arith.constant 0 : i32
    return %c0_i32, %c0_i32_0, %c0_i32_1 : i32, i32, i32
  }
  func.func @transform_5(%arg0: i32) -> (i32, i32, i32) {
    %c0_i32 = arith.constant 0 : i32
    %c0_i32_0 = arith.constant 0 : i32
    %c0_i32_1 = arith.constant 0 : i32
    %c0_i32_2 = arith.constant 0 : i32
    return %c0_i32, %c0_i32_0, %c0_i32_1 : i32, i32, i32
  }
  func.func @transform_6(%arg0: i32) -> (i32, i32, i32) {
    %c0_i32 = arith.constant 0 : i32
    %c0_i32_0 = arith.constant 0 : i32
    %c0_i32_1 = arith.constant 0 : i32
    %c0_i32_2 = arith.constant 0 : i32
    return %c0_i32, %c0_i32_0, %c0_i32_1 : i32, i32, i32
  }
  func.func @transform_7(%arg0: i32) -> (i32, i32, i32) {
    %c0_i32 = arith.constant 0 : i32
    %c0_i32_0 = arith.constant 0 : i32
    %c0_i32_1 = arith.constant 0 : i32
    %c0_i32_2 = arith.constant 0 : i32
    return %c0_i32, %c0_i32_0, %c0_i32_1 : i32, i32, i32
  }
  func.func @transform_8(%arg0: i32) -> (i32, i32, i32) {
    %c0_i32 = arith.constant 0 : i32
    %c0_i32_0 = arith.constant 0 : i32
    %c0_i32_1 = arith.constant 0 : i32
    %c0_i32_2 = arith.constant 0 : i32
    return %c0_i32, %c0_i32_0, %c0_i32_1 : i32, i32, i32
  }
  func.func @transform_9(%arg0: i32) -> (i32, i32, i32) {
    %c0_i32 = arith.constant 0 : i32
    %c0_i32_0 = arith.constant 0 : i32
    %c0_i32_1 = arith.constant 0 : i32
    %c0_i32_2 = arith.constant 0 : i32
    return %c0_i32, %c0_i32_0, %c0_i32_1 : i32, i32, i32
  }
  func.func @transform_10(%arg0: i32) -> (i32, i32, i32) {
    %c0_i32 = arith.constant 0 : i32
    %c0_i32_0 = arith.constant 0 : i32
    %c0_i32_1 = arith.constant 0 : i32
    %c0_i32_2 = arith.constant 0 : i32
    return %c0_i32, %c0_i32_0, %c0_i32_1 : i32, i32, i32
  }
  func.func @transform_11(%arg0: i32) -> (i32, i32, i32) {
    %c0_i32 = arith.constant 0 : i32
    %c0_i32_0 = arith.constant 0 : i32
    %c0_i32_1 = arith.constant 0 : i32
    %c0_i32_2 = arith.constant 0 : i32
    return %c0_i32, %c0_i32_0, %c0_i32_1 : i32, i32, i32
  }
  func.func @transform_12(%arg0: i32) -> (i32, i32) {
    %c0_i32 = arith.constant 0 : i32
    %c0_i32_0 = arith.constant 0 : i32
    %c0_i32_1 = arith.constant 0 : i32
    return %c0_i32, %c0_i32_0 : i32, i32
  }
  func.func @transform_13(%arg0: i32) -> (i32, i32) {
    %c0_i32 = arith.constant 0 : i32
    %c0_i32_0 = arith.constant 0 : i32
    %c0_i32_1 = arith.constant 0 : i32
    return %c0_i32, %c0_i32_0 : i32, i32
  }
  func.func @transform_14(%arg0: i32) -> (i32, i32) {
    %c0_i32 = arith.constant 0 : i32
    %c0_i32_0 = arith.constant 0 : i32
    %c0_i32_1 = arith.constant 0 : i32
    return %c0_i32, %c0_i32_0 : i32, i32
  }
  func.func @transform_15(%arg0: i32) -> (i32, i32) {
    %c0_i32 = arith.constant 0 : i32
    %c0_i32_0 = arith.constant 0 : i32
    return %arg0, %c0_i32 : i32, i32
  }
  func.func @transform_16(%arg0: i32) -> (i32, i32) {
    %c0_i32 = arith.constant 0 : i32
    %c0_i32_0 = arith.constant 0 : i32
    return %arg0, %c0_i32 : i32, i32
  }
}

</mosaic_0001>

<bundles_post_ra>
// kernel: tpu_custom_call.1
= control target key start
LH: loop header
LB: loop body
LE: loop exit
PB: predicated region body
PF: predicated region fallthrough
CT: control target
= control target key end

     0   :  { %s3080_s0 = inlined_call_operand.vmem [shape: f32[8,16], index: 0, kind: input, shape index: {}]   ;;  %s3081_s1 = inlined_call_operand.vmem [shape: f32[1,16], index: 1, kind: input, shape index: {}]   ;;  %s3082_s2 = inlined_call_operand.vmem [shape: f32[1,16], index: 2, kind: input, shape index: {}]   ;;  %s3083_s3 = inlined_call_operand.vmem [shape: bf16[8,8,64], index: 3, kind: input, shape index: {}]   ;;  %s3084_s4 = inlined_call_operand.vmem [shape: f32[8,1,64], index: 4, kind: input, shape index: {}]   ;;  %s3085_s5 = inlined_call_operand.hbm [shape: bf16[16,64,64], index: 5, kind: input, shape index: {}]   ;;  %s3086_s6 = inlined_call_operand.vmem [shape: f32[16,1,64], index: 6, kind: input, shape index: {}]   ;;  %s3087_s7 = inlined_call_operand.vmem [shape: bf16[8,64,16], index: 7, kind: input, shape index: {}]   ;;  %s3088_s8 = inlined_call_operand.vmem [shape: f32[8,1,16], index: 8, kind: input, shape index: {}]   ;;  %s3089_s9 = inlined_call_operand.vmem [shape: bf16[3,8,80], index: 9, kind: input, shape index: {}]   ;;  %s3090_s10 = inlined_call_operand.vmem [shape: bf16[3,8,80], index: 10, kind: input, shape index: {}]   ;;  %s3091_s11 = inlined_call_operand.vmem [shape: f32[3,1,80], index: 11, kind: input, shape index: {}]   ;;  %s3092_s12 = inlined_call_operand.vmem [shape: bf16[8,16], index: 12, kind: input, shape index: {}]   ;;  %s3093_s13 = inlined_call_operand.vmem [shape: bf16[8,16], index: 13, kind: input, shape index: {}]   ;;  %s3094_s14 = inlined_call_operand.vmem [shape: f32[1,16], index: 14, kind: input, shape index: {}]   ;;  %s3095_s15 = inlined_call_operand.hbm [shape: f32[8,16], index: 15, kind: output, shape index: {0}]   ;;  %s3096_s16 = inlined_call_operand.vmem [shape: f32[8,1], index: 16, kind: output, shape index: {1}]  }
   0x1   :  { %3097 = sst [smem:[#allocation8_spill]] %s3080_s0 }
   0x2   :  { %22 = vsyncpa [#allocation3], 0 }
   0x3   :  { %23 = vsyncpa [#allocation4], 0  ;;  %s38_s23 = sshll.u32 %s3085_s5, 4  ;;  %s2623_s24 = smov [#allocation2]   ;;  %s39_s23 = int_to_ptr.hbm [resolvable:$true] %s38_s23 }
   0x4   :  { %s40_s25 = sshll.u32 %s2623_s24, 4  ;;  %s2624_s26 = smov 64   ;;  %s41_s25 = int_to_ptr.vmem [resolvable:$true] %s40_s25 }
   0x5   :  { %s2625_s27 = smov 4  }
   0x6   :  { %46 = dma.hbm_to_vmem [thread:$0]  %s39_s23, 8192, %s41_s25, [#allocation3], %s2624_s26, %s2624_s26, %s2625_s27  }
   0x7   :  { %2619 = dma.done.wait [#allocation3], 8192  }
   0x8   :  { %2620 = vsyncadd [#allocation3], 4294959104  ;;  %vm91_vm0 = vcmask 1043456   ;;  %v81_v0 = vld [vmem:[%s3083_s3] sm:$0xf]  ;;  %s3098_s17 = sld [smem:[#allocation8_spill]] }
   0x9   :  { %v93_v2 = vsel %vm91_vm0, %v81_v0, 0  ;;  %v2504_v3 = vld [vmem:[%s3081_s1] ss:$0 sm:$0xff]  ;;  %v2404_v4 = vld [vmem:[#allocation2 + $0x18] sm:$0xff]  ;;  %vm87_vm1 = vcmask 64512   ;;  %v2403_v7 = vld [vmem:[#allocation2 + $0x10] sm:$0xff] }
   0xa   :  { %102 = vmatpush.bf16.msra.mxu0 %v93_v2  ;;  %v2505_v5 = vld [vmem:[%s3082_s2] ss:$0 sm:$0xff]  ;;  %155 = vmatpush.bf16.msra.mxu1 %v2404_v4  ;;  %v2402_v10 = vld [vmem:[#allocation2 + $0x8] sm:$0xff]  ;;  %v2408_v12 = vld [vmem:[#allocation2 + $0x38] sm:$0xff]  ;;  %vm147_vm2 = vcmask 523264   ;;  %s2626_s19 = smov 8  }
   0xb   :  { %v2401_v11 = vld [vmem:[#allocation2] sm:$0xff]  ;;  %212 = vmatpush.bf16.msra.mxu2 %v2408_v12  ;;  %v2407_v13 = vld [vmem:[#allocation2 + $0x30] sm:$0xff]  ;;  %v2406_v21 = vld [vmem:[#allocation2 + $0x28] sm:$0xff]  ;;  %s2627_s2 = smov 120   ;;  %s2628_s27 = smov 112   ;;  %vm1865_vm3 = vcmask 7168  }
   0xc   :  { %v2506_v14 = vld [vmem:[%s3084_s4] ss:$0 sm:$0xff]  ;;  %v2412_v23 = vld [vmem:[%s3087_s7 + $0x18] sm:$0xff]  ;;  %v2411_v24 = vld [vmem:[%s3087_s7 + $0x10] sm:$0xff]  ;;  %s2629_s1 = smov [#allocation5]   ;;  %s1874_s23 = sshll.u32 %s3095_s15, 4  ;;  %s1875_s23 = int_to_ptr.hbm [resolvable:$true] %s1874_s23 }
   0xd   :  { %v2405_v22 = vld [vmem:[#allocation2 + $0x20] sm:$0xff]  ;;  %267 = vmatpush.bf16.msra.mxu3 %v2412_v23  ;;  %v2410_v32 = vld [vmem:[%s3087_s7 + $0x8] sm:$0xff]  ;;  %v2416_v56 = vld [vmem:[#allocation2 + $0x58] sm:$0xff]  ;;  %s1872_s21 = sshll.u32 %s2629_s1, 4  ;;  %vm1860_vm4 = vcmask 130048   ;;  %s1873_s21 = int_to_ptr.vmem [resolvable:$true] %s1872_s21 }
   0xe   :  { %v70_v1 = vld [vmem:[%s3098_s17] sm:$0xff]  ;;  %156 = vmatpush.bf16.msra.mxu1 %v2403_v7  ;;  %v2415_v57 = vld [vmem:[#allocation2 + $0x50] sm:$0xff]  ;;  %v2414_v59 = vld [vmem:[#allocation2 + $0x48] sm:$0xff] }
   0xf   :  { %v76_v6 = vadd.f32 %v2504_v3, %v70_v1  ;;  %213 = vmatpush.bf16.msra.mxu2 %v2407_v13  ;;  %v2507_v25 = vld [vmem:[%s3086_s6] ss:$0 sm:$0xff]  ;;  %v2508_v34 = vld [vmem:[%s3086_s6 + $0x1] ss:$0 sm:$0xff]  ;;  %v1941_v48 = vld [vmem:[%s3083_s3 + $0x4] sm:$0xf] }
  0x10   :  { %v2409_v33 = vld [vmem:[%s3087_s7] sm:$0xff]  ;;  %v301_v49 = vsel %vm91_vm0, %v1941_v48, 0  ;;  %v2420_v61 = vld [vmem:[#allocation2 + $0x78] sm:$0xff]  ;;  %v2419_v62 = vld [vmem:[#allocation2 + $0x70] sm:$0xff] }
  0x11   :  { %v2731_v8 = vmul.f32 %v2505_v5, %v76_v6  ;;  %268 = vmatpush.bf16.msra.mxu3 %v2411_v24  ;;  %v2509_v41 = vld [vmem:[%s3088_s8] ss:$0 sm:$0xff]  ;;  %310 = vmatpush.bf16.msrb.mxu0 %v301_v49  ;;  %v2510_v63 = vld [vmem:[%s3084_s4 + $0x1] ss:$0 sm:$0xff]  ;;  %v2423_v12 = vld [vmem:[%s3087_s7 + $0x30] sm:$0xff] }
  0x12   :  { %157 = vmatpush.bf16.msra.mxu1 %v2402_v10  ;;  %v498_v54 = vld [vmem:[%s3090_s10] sm:$0xf] }
  0x13   :  { %v83_v9 = vpack.c.bf16 %v2731_v8, %v2731_v8  ;;  %214 = vmatpush.bf16.msra.mxu2 %v2406_v21  ;;  %v502_v55 = vsel %vm91_vm0, %v498_v54, 0  ;;  %v2413_v60 = vld [vmem:[#allocation2 + $0x40] sm:$0xff]  ;;  %v2432_v54 = vld [vmem:[#allocation2 + $0xb8] sm:$0xff] }
  0x14   :  { %v2417_v10 = vld [vmem:[#allocation2 + $0x60] sm:$0xff] }
  0x15   :  { %1888 = vmatmul.msk.bf16.vlgmr.msra.gmra.mxu0 %vm87_vm1, %v83_v9  ;;  %269 = vmatpush.bf16.msra.mxu3 %v2410_v32  ;;  %v2418_v9 = vld [vmem:[#allocation2 + $0x68] sm:$0xff]  ;;  %v2511_v13 = vld [vmem:[%s3086_s6 + $0x2] ss:$0 sm:$0xff] }
  0x16   :  { %158 = vmatpush.bf16.msra.mxu1 %v2401_v11  ;;  %511 = vmatpush.bf16.msra.mxu0 %v502_v55  ;;  %v2424_v11 = vld [vmem:[%s3087_s7 + $0x38] sm:$0xff]  ;;  %v2421_v21 = vld [vmem:[%s3087_s7 + $0x20] sm:$0xff]  ;;  %v2431_v55 = vld [vmem:[#allocation2 + $0xb0] sm:$0xff] }
  0x17   :  { %215 = vmatpush.bf16.msra.mxu2 %v2405_v22  ;;  %v2512_v22 = vld [vmem:[%s3086_s6 + $0x3] ss:$0 sm:$0xff] }
  0x19   :  { %270 = vmatpush.bf16.msra.mxu3 %v2409_v33 }
  0x1a   :  { %364 = vmatpush.bf16.msrb.mxu1 %v2416_v56 }
  0x1b   :  { %421 = vmatpush.bf16.msrb.mxu2 %v2420_v61  ;;  %v2515_v61 = vld [vmem:[%s3086_s6 + $0x4] ss:$0 sm:$0xff] }
  0x1d   :  { %478 = vmatpush.bf16.msrb.mxu3 %v2424_v11 }
  0x1e   :  { %365 = vmatpush.bf16.msrb.mxu1 %v2415_v57  ;;  %v2430_v57 = vld [vmem:[#allocation2 + $0xa8] sm:$0xff] }
  0x1f   :  { %422 = vmatpush.bf16.msrb.mxu2 %v2419_v62 }
  0x21   :  { %479 = vmatpush.bf16.msrb.mxu3 %v2423_v12 }
  0x22   :  { %366 = vmatpush.bf16.msrb.mxu1 %v2414_v59  ;;  %v2436_v59 = vld [vmem:[%s3087_s7 + $0x58] sm:$0xff] }
  0x23   :  { %423 = vmatpush.bf16.msrb.mxu2 %v2418_v9 }
  0x26   :  { %367 = vmatpush.bf16.msrb.mxu1 %v2413_v60  ;;  %v2435_v60 = vld [vmem:[%s3087_s7 + $0x50] sm:$0xff] }
  0x27   :  { %424 = vmatpush.bf16.msrb.mxu2 %v2417_v10 }
  0x92   :  { %v104_v15 = vpop.f32.mrf.mxu0 }
  0x93   :  { %v105_v16 = vadd.f32 %v2506_v14, %v104_v15 }
  0x95   :  { %v108_v17 = vmul.f32 0.01, %v105_v16 }
  0x97   :  { %v109_v18 = vmax.f32 %v105_v16, %v108_v17 }
  0x99   :  { %v119_v19 = vpack.c.bf16 %v109_v18, %v109_v18 }
  0x9a   :  { %v106_v20 = vpop.f32.mrf.mxu0 }
  0x9b   :  { %1905 = vmatmul.msk.bf16.vlgmr.msra.gmra.mxu1 %vm147_vm2, %v119_v19  ;;  %v2422_v20 = vld [vmem:[%s3087_s7 + $0x28] sm:$0xff] }
  0x9c   :  { %480 = vmatpush.bf16.msrb.mxu3 %v2422_v20 }
  0xa0   :  { %481 = vmatpush.bf16.msrb.mxu3 %v2421_v21 }
 0x118   :  { %v160_v26 = vpop.f32.mrf.mxu1 }
 0x119   :  { %v161_v27 = vadd.f32 %v2507_v25, %v160_v26 }
 0x11b   :  { %v164_v28 = vmul.f32 0.01, %v161_v27 }
 0x11d   :  { %v165_v29 = vmax.f32 %v161_v27, %v164_v28 }
 0x11f   :  { %v177_v30 = vpack.c.bf16 %v165_v29, %v165_v29  ;;  %v497_v29 = vld [vmem:[%s3089_s9] sm:$0xf] }
 0x120   :  { %v162_v31 = vpop.f32.mrf.mxu1 }
 0x121   :  { %1923 = vmatmul.msk.bf16.vlgmr.msra.gmra.mxu2 %vm147_vm2, %v177_v30  ;;  %v521_v30 = vsel %vm91_vm0, %v497_v29, 0  ;;  %v2513_v31 = vld [vmem:[%s3088_s8 + $0x1] ss:$0 sm:$0xff] }
 0x122   :  { %530 = vmatpush.bf16.msra.mxu1 %v521_v30  ;;  %v2440_v30 = vld [vmem:[#allocation2 + $0xd8] sm:$0xff] }
 0x1a4   :  { %v217_v35 = vpop.f32.mrf.mxu2 }
 0x1a5   :  { %v218_v36 = vadd.f32 %v2508_v34, %v217_v35 }
 0x1a7   :  { %v221_v37 = vmul.f32 0.01, %v218_v36 }
 0x1a9   :  { %v222_v38 = vmax.f32 %v218_v36, %v221_v37 }
 0x1ab   :  { %v232_v39 = vpack.c.bf16 %v222_v38, %v222_v38 }
 0x1ac   :  { %v219_v40 = vpop.f32.mrf.mxu2 }
 0x1ad   :  { %1940 = vmatmul.msk.bf16.vlgmr.msra.gmra.mxu3 %vm147_vm2, %v232_v39 }
 0x1ae   :  { %648 = vmatpush.bf16.msra.mxu3 %v2432_v54 }
 0x1b2   :  { %649 = vmatpush.bf16.msra.mxu3 %v2431_v55 }
 0x1b6   :  { %650 = vmatpush.bf16.msra.mxu3 %v2430_v57 }
 0x230   :  { %v272_v42 = vpop.f32.mrf.mxu3 }
 0x231   :  { %v273_v43 = vadd.f32 %v2509_v41, %v272_v42  ;;  %v2428_v42 = vld [vmem:[#allocation2 + $0x98] sm:$0xff] }
 0x232   :  { %591 = vmatpush.bf16.msra.mxu2 %v2428_v42 }
 0x233   :  { %2539 = vtanh.f32 %v273_v43 }
 0x238   :  { %v274_v44 = vpop.f32.mrf.mxu3 }
 0x239   :  { %v2763_v45 = vpop.eup %2539  ;;  %v2426_v44 = vld [vmem:[#allocation2 + $0x88] sm:$0xff] }
 0x23a   :  { %v277_v46 = vmul.f32 1.442695, %v2763_v45 }
 0x23c   :  { %2541 = vpow2.f32 %v277_v46  ;;  %v2425_v46 = vld [vmem:[#allocation2 + $0x80] sm:$0xff] }
 0x242   :  { %v2542_v47 = vpop.eup %2541 }
 0x243   :  { %280 = vrot.lane.b32.xlu0 %v2542_v47, %s2626_s19  ;;  %v2514_v47 = vld [vmem:[%s3091_s11] ss:$0 sm:$0xff] }
 0x2b5   :  { %v281_v50 = vpop.permute.xlu0 %280 }
 0x2b6   :  { %v283_v51 = vmul.f32 %v281_v50, %v2731_v8 }
 0x2b8   :  { %v284_v52 = vadd.f32 %v283_v51, %v273_v43  ;;  %v2427_v43 = vld [vmem:[#allocation2 + $0x90] sm:$0xff] }
 0x2b9   :  { %592 = vmatpush.bf16.msra.mxu2 %v2427_v43 }
 0x2ba   :  { %v290_v53 = vpack.c.bf16 %v284_v52, %v284_v52 }
 0x2bc   :  { %295 = vrot.lane.b32.xlu0 %v290_v53, %s2627_s2 }
 0x2bd   :  { %593 = vmatpush.bf16.msra.mxu2 %v2426_v44 }
 0x2c1   :  { %594 = vmatpush.bf16.msra.mxu2 %v2425_v46 }
 0x32e   :  { %v296_v58 = vpop.permute.xlu0 %295 }
 0x32f   :  { %1943 = vmatmul.msk.bf16.vlgmr.msrb.gmra.mxu0 %vm87_vm1, %v296_v58 }
 0x330   :  { %705 = vmatpush.bf16.msrb.mxu0 %v2436_v59  ;;  %v2445_v59 = vld [vmem:[%s3087_s7 + $0x60] sm:$0xff] }
 0x334   :  { %706 = vmatpush.bf16.msrb.mxu0 %v2435_v60  ;;  %v2520_v60 = vld [vmem:[%s3086_s6 + $0x7] ss:$0 sm:$0xff] }
 0x33f   :  { %2006 = vmatmul.msk.bf16.vlgmr.msra.gmra.mxu0 %vm87_vm1, %v296_v58  ;;  %v2429_v58 = vld [vmem:[#allocation2 + $0xa0] sm:$0xff] }
 0x340   :  { %651 = vmatpush.bf16.msra.mxu3 %v2429_v58  ;;  %v2446_v58 = vld [vmem:[%s3087_s7 + $0x68] sm:$0xff] }
 0x3ac   :  { %v312_v0 = vpop.f32.mrf.mxu0 }
 0x3ad   :  { %v313_v1 = vadd.f32 %v2510_v63, %v312_v0 }
 0x3af   :  { %v316_v2 = vmul.f32 0.01, %v313_v1 }
 0x3b1   :  { %v317_v3 = vmax.f32 %v313_v1, %v316_v2 }
 0x3b3   :  { %v329_v4 = vpack.c.bf16 %v317_v3, %v317_v3 }
 0x3b4   :  { %v314_v5 = vpop.f32.mrf.mxu0 }
 0x3b5   :  { %1961 = vmatmul.msk.bf16.vlgmr.msrb.gmra.mxu1 %vm147_vm2, %v329_v4  ;;  %v2434_v4 = vld [vmem:[%s3087_s7 + $0x48] sm:$0xff]  ;;  %v2433_v5 = vld [vmem:[%s3087_s7 + $0x40] sm:$0xff] }
 0x3b6   :  { %707 = vmatpush.bf16.msrb.mxu0 %v2434_v4 }
 0x3ba   :  { %708 = vmatpush.bf16.msrb.mxu0 %v2433_v5  ;;  %v2521_v5 = vld [vmem:[%s3088_s8 + $0x3] ss:$0 sm:$0xff] }
 0x3bc   :  { %v513_v6 = vpop.f32.mrf.mxu0 }
 0x3c4   :  { %v515_v7 = vpop.f32.mrf.mxu0 }
 0x432   :  { %v369_v14 = vpop.f32.mrf.mxu1 }
 0x433   :  { %v370_v15 = vadd.f32 %v2511_v13, %v369_v14  ;;  %v2517_v14 = vld [vmem:[%s3088_s8 + $0x2] ss:$0 sm:$0xff] }
 0x435   :  { %v373_v16 = vmul.f32 0.01, %v370_v15 }
 0x437   :  { %v374_v17 = vmax.f32 %v370_v15, %v373_v16 }
 0x439   :  { %v386_v18 = vpack.c.bf16 %v374_v17, %v374_v17 }
 0x43a   :  { %v371_v19 = vpop.f32.mrf.mxu1 }
 0x43b   :  { %1979 = vmatmul.msk.bf16.vlgmr.msrb.gmra.mxu2 %vm147_vm2, %v386_v18 }
 0x43c   :  { %802 = vmatpush.bf16.msrb.mxu2 %v2440_v30 }
 0x4be   :  { %v426_v23 = vpop.f32.mrf.mxu2 }
 0x4bf   :  { %v427_v24 = vadd.f32 %v2512_v22, %v426_v23  ;;  %v2070_v23 = vld [vmem:[%s3083_s3 + $0xc] sm:$0xf] }
 0x4c1   :  { %v430_v25 = vmul.f32 0.01, %v427_v24 }
 0x4c3   :  { %v431_v26 = vmax.f32 %v427_v24, %v430_v25  ;;  %v739_v24 = vsel %vm91_vm0, %v2070_v23, 0 }
 0x4c4   :  { %748 = vmatpush.bf16.msrb.mxu1 %v739_v24 }
 0x4c5   :  { %v443_v27 = vpack.c.bf16 %v431_v26, %v431_v26 }
 0x4c6   :  { %v428_v28 = vpop.f32.mrf.mxu2 }
 0x4c7   :  { %2005 = vmatmul.msk.bf16.vlgmr.msrb.gmra.mxu3 %vm147_vm2, %v443_v27  ;;  %v2136_v28 = vld [vmem:[%s3090_s10 + $0x4] sm:$0xf] }
 0x4c8   :  { %v943_v29 = vsel %vm91_vm0, %v2136_v28, 0  ;;  %v2456_v28 = vld [vmem:[#allocation2 + $0x138] sm:$0xff] }
 0x54a   :  { %v483_v32 = vpop.f32.mrf.mxu3 }
 0x54b   :  { %v484_v33 = vadd.f32 %v2513_v31, %v483_v32  ;;  %v2439_v31 = vld [vmem:[#allocation2 + $0xd0] sm:$0xff] }
 0x54c   :  { %803 = vmatpush.bf16.msrb.mxu2 %v2439_v31  ;;  %v2454_v31 = vld [vmem:[#allocation2 + $0x128] sm:$0xff] }
 0x54d   :  { %492 = vrot.lane.b32.xlu1 %v484_v33, %s2627_s2  ;;  %2543 = vtanh.f32 %v484_v33  ;;  %v2438_v33 = vld [vmem:[#allocation2 + $0xc8] sm:$0xff] }
 0x550   :  { %804 = vmatpush.bf16.msrb.mxu2 %v2438_v33  ;;  %v2460_v33 = vld [vmem:[%s3087_s7 + $0x98] sm:$0xff] }
 0x552   :  { %v485_v34 = vpop.f32.mrf.mxu3 }
 0x553   :  { %v2811_v35 = vpop.eup %2543  ;;  %v2437_v34 = vld [vmem:[#allocation2 + $0xc0] sm:$0xff] }
 0x554   :  { %v488_v36 = vmul.f32 1.442695, %v2811_v35  ;;  %v496_v17 = vadd.f32 %v2811_v35, %v2763_v45  ;;  %805 = vmatpush.bf16.msrb.mxu2 %v2437_v34  ;;  %v2444_v35 = vld [vmem:[#allocation2 + $0xf8] sm:$0xff]  ;;  %v2459_v34 = vld [vmem:[%s3087_s7 + $0x90] sm:$0xff] }
 0x555   :  { %859 = vmatpush.bf16.msrb.mxu3 %v2444_v35  ;;  %v2523_v35 = vld [vmem:[%s3086_s6 + $0x8] ss:$0 sm:$0xff] }
 0x556   :  { %2545 = vpow2.f32 %v488_v36  ;;  %v2443_v36 = vld [vmem:[#allocation2 + $0xf0] sm:$0xff] }
 0x559   :  { %860 = vmatpush.bf16.msrb.mxu3 %v2443_v36 }
 0x55c   :  { %v2546_v37 = vpop.eup %2545 }
 0x55d   :  { %v490_v38 = vmul.f32 %v2546_v37, %v2731_v8  ;;  %v2518_v37 = vld [vmem:[%s3084_s4 + $0x3] ss:$0 sm:$0xff] }
 0x5bf   :  { %v493_v39 = vpop.permute.xlu1 %492 }
 0x5c0   :  { %v495_v40 = vadd.f32 %v493_v39, %v490_v38 }
 0x5c2   :  { %v500_v41 = vpack.c.bf16 %v495_v40, %v495_v40 }
 0x5c4   :  { %2007 = vmatmul.msk.bf16.vlgmr.msra.gmra.mxu1 %vm87_vm1, %v500_v41 }
 0x5c5   :  { %952 = vmatpush.bf16.msra.mxu1 %v943_v29  ;;  %v2455_v29 = vld [vmem:[#allocation2 + $0x130] sm:$0xff] }
 0x641   :  { %v532_v48 = vpop.f32.mrf.mxu1 }
 0x642   :  { %v533_v49 = vadd.f32 %v532_v48, %v513_v6  ;;  %v2516_v6 = vld [vmem:[%s3086_s6 + $0x5] ss:$0 sm:$0xff] }
 0x643   :  { %v2441_v48 = vld [vmem:[#allocation2 + $0xe0] sm:$0xff] }
 0x644   :  { %v2819_v8 = vadd.f32 %v2514_v47, %v533_v49  ;;  %v2442_v47 = vld [vmem:[#allocation2 + $0xe8] sm:$0xff]  ;;  %v2448_v49 = vld [vmem:[%s3087_s7 + $0x78] sm:$0xff] }
 0x645   :  { %861 = vmatpush.bf16.msrb.mxu3 %v2442_v47  ;;  %916 = vmatpush.bf16.msra.mxu0 %v2448_v49 }
 0x646   :  { %v540_v50 = vmul.f32 0.01, %v2819_v8 }
 0x648   :  { %v541_v51 = vmax.f32 %v2819_v8, %v540_v50  ;;  %v2447_v50 = vld [vmem:[%s3087_s7 + $0x70] sm:$0xff] }
 0x649   :  { %v534_v52 = vpop.f32.mrf.mxu1  ;;  %862 = vmatpush.bf16.msrb.mxu3 %v2441_v48  ;;  %917 = vmatpush.bf16.msra.mxu0 %v2447_v50 }
 0x64a   :  { %v553_v53 = vpack.c.bf16 %v541_v51, %v541_v51  ;;  %v2519_v51 = vld [vmem:[%s3086_s6 + $0x6] ss:$0 sm:$0xff] }
 0x64c   :  { %558 = vrot.lane.b32.xlu1 %v553_v53, %s2628_s27 }
 0x64d   :  { %918 = vmatpush.bf16.msra.mxu0 %v2446_v58 }
 0x651   :  { %919 = vmatpush.bf16.msra.mxu0 %v2445_v59 }
 0x6be   :  { %v559_v56 = vpop.permute.xlu1 %558 }
 0x6bf   :  { %2025 = vmatmul.msk.bf16.vlgmr.msra.gmra.mxu2 %vm147_vm2, %v559_v56 }
 0x742   :  { %v596_v62 = vpop.f32.mrf.mxu2 }
 0x743   :  { %v597_v63 = vadd.f32 %v2515_v61, %v596_v62 }
 0x745   :  { %v600_v0 = vmul.f32 0.01, %v597_v63 }
 0x747   :  { %v601_v1 = vmax.f32 %v597_v63, %v600_v0 }
 0x749   :  { %v613_v2 = vpack.c.bf16 %v601_v1, %v601_v1 }
 0x74a   :  { %v598_v3 = vpop.f32.mrf.mxu2 }
 0x74b   :  { %2043 = vmatmul.msk.bf16.vlgmr.msra.gmra.mxu3 %vm147_vm2, %v613_v2  ;;  %v2135_v3 = vld [vmem:[%s3089_s9 + $0x4] sm:$0xf] }
 0x74c   :  { %v962_v4 = vsel %vm91_vm0, %v2135_v3, 0 }
 0x74d   :  { %971 = vmatpush.bf16.msra.mxu2 %v962_v4  ;;  %v2464_v4 = vld [vmem:[#allocation2 + $0x158] sm:$0xff] }
 0x7ce   :  { %v653_v7 = vpop.f32.mrf.mxu3 }
 0x7cf   :  { %v654_v9 = vadd.f32 %v2516_v6, %v653_v7 }
 0x7d1   :  { %v657_v10 = vmul.f32 0.01, %v654_v9 }
 0x7d3   :  { %v658_v11 = vmax.f32 %v654_v9, %v657_v10 }
 0x7d5   :  { %v670_v12 = vpack.c.bf16 %v658_v11, %v658_v11 }
 0x7d6   :  { %v655_v13 = vpop.f32.mrf.mxu3 }
 0x7d7   :  { %2069 = vmatmul.msk.bf16.vlgmr.msrb.gmra.mxu0 %vm147_vm2, %v670_v12 }
 0x7d8   :  { %1089 = vmatpush.bf16.msrb.mxu0 %v2456_v28 }
 0x7dc   :  { %1090 = vmatpush.bf16.msrb.mxu0 %v2455_v29 }
 0x7e0   :  { %1091 = vmatpush.bf16.msrb.mxu0 %v2454_v31  ;;  %v2470_v31 = vld [vmem:[%s3087_s7 + $0xa8] sm:$0xff] }
 0x854   :  { %v710_v15 = vpop.f32.mrf.mxu0 }
 0x855   :  { %v711_v16 = vadd.f32 %v2517_v14, %v710_v15 }
 0x857   :  { %2547 = vtanh.f32 %v711_v16 }
 0x85c   :  { %v712_v18 = vpop.f32.mrf.mxu0 }
 0x85d   :  { %v2548_v19 = vpop.eup %2547  ;;  %v2452_v18 = vld [vmem:[#allocation2 + $0x118] sm:$0xff] }
 0x85e   :  { %v2850_v20 = vadd.f32 %v2548_v19, %v496_v17  ;;  %v715_v21 = vmul.f32 1.442695, %v2548_v19  ;;  %1032 = vmatpush.bf16.msra.mxu3 %v2452_v18  ;;  %v2451_v19 = vld [vmem:[#allocation2 + $0x110] sm:$0xff] }
 0x860   :  { %2549 = vpow2.f32 %v715_v21  ;;  %v2450_v21 = vld [vmem:[#allocation2 + $0x108] sm:$0xff] }
 0x862   :  { %1033 = vmatpush.bf16.msra.mxu3 %v2451_v19 }
 0x866   :  { %v2550_v22 = vpop.eup %2549  ;;  %1034 = vmatpush.bf16.msra.mxu3 %v2450_v21 }
 0x867   :  { %718 = vrot.lane.b32.xlu2 %v2550_v22, %s2626_s19  ;;  %v2449_v22 = vld [vmem:[#allocation2 + $0x100] sm:$0xff] }
 0x86a   :  { %1035 = vmatpush.bf16.msra.mxu3 %v2449_v22  ;;  %v2466_v22 = vld [vmem:[#allocation2 + $0x168] sm:$0xff] }
 0x8c1   :  { %v719_v25 = vpop.permute.xlu2 %718 }
 0x8c2   :  { %v721_v26 = vmul.f32 %v719_v25, %v2819_v8 }
 0x8c4   :  { %v722_v45 = vadd.f32 %v721_v26, %v711_v16 }
 0x8c6   :  { %v728_v27 = vpack.c.bf16 %v722_v45, %v722_v45 }
 0x8c8   :  { %733 = vrot.lane.b32.xlu2 %v728_v27, %s2627_s2 }
 0x922   :  { %v734_v32 = vpop.permute.xlu2 %733 }
 0x923   :  { %2072 = vmatmul.msk.bf16.vlgmr.msrb.gmra.mxu1 %vm87_vm1, %v734_v32 }
 0x924   :  { %1146 = vmatpush.bf16.msrb.mxu1 %v2460_v33  ;;  %v2528_v33 = vld [vmem:[%s3086_s6 + $0xb] ss:$0 sm:$0xff] }
 0x928   :  { %1147 = vmatpush.bf16.msrb.mxu1 %v2459_v34 }
 0x933   :  { %2138 = vmatmul.msk.bf16.vlgmr.msra.gmra.mxu1 %vm87_vm1, %v734_v32  ;;  %v2453_v32 = vld [vmem:[#allocation2 + $0x120] sm:$0xff] }
 0x934   :  { %1092 = vmatpush.bf16.msrb.mxu0 %v2453_v32  ;;  %v2469_v32 = vld [vmem:[%s3087_s7 + $0xa0] sm:$0xff] }
 0x9a0   :  { %v750_v38 = vpop.f32.mrf.mxu1 }
 0x9a1   :  { %v751_v39 = vadd.f32 %v2518_v37, %v750_v38 }
 0x9a3   :  { %v754_v40 = vmul.f32 0.01, %v751_v39 }
 0x9a5   :  { %v755_v41 = vmax.f32 %v751_v39, %v754_v40 }
 0x9a7   :  { %v767_v42 = vpack.c.bf16 %v755_v41, %v755_v41 }
 0x9a8   :  { %v752_v43 = vpop.f32.mrf.mxu1 }
 0x9a9   :  { %2090 = vmatmul.msk.bf16.vlgmr.msrb.gmra.mxu2 %vm147_vm2, %v767_v42  ;;  %v2458_v42 = vld [vmem:[%s3087_s7 + $0x88] sm:$0xff]  ;;  %v2457_v43 = vld [vmem:[%s3087_s7 + $0x80] sm:$0xff] }
 0x9aa   :  { %1148 = vmatpush.bf16.msrb.mxu1 %v2458_v42  ;;  %v2529_v42 = vld [vmem:[%s3088_s8 + $0x5] ss:$0 sm:$0xff] }
 0x9ae   :  { %1149 = vmatpush.bf16.msrb.mxu1 %v2457_v43 }
 0x9b0   :  { %v954_v44 = vpop.f32.mrf.mxu1 }
 0x9b8   :  { %v956_v46 = vpop.f32.mrf.mxu1 }
 0xa2c   :  { %v807_v52 = vpop.f32.mrf.mxu2 }
 0xa2d   :  { %v808_v53 = vadd.f32 %v2519_v51, %v807_v52  ;;  %v2525_v52 = vld [vmem:[%s3088_s8 + $0x4] ss:$0 sm:$0xff] }
 0xa2f   :  { %v811_v54 = vmul.f32 0.01, %v808_v53 }
 0xa31   :  { %v812_v55 = vmax.f32 %v808_v53, %v811_v54 }
 0xa33   :  { %v824_v56 = vpack.c.bf16 %v812_v55, %v812_v55 }
 0xa34   :  { %v809_v57 = vpop.f32.mrf.mxu2 }
 0xa35   :  { %2108 = vmatmul.msk.bf16.vlgmr.msrb.gmra.mxu3 %vm147_vm2, %v824_v56 }
 0xa36   :  { %1243 = vmatpush.bf16.msrb.mxu3 %v2464_v4 }
 0xab8   :  { %v864_v61 = vpop.f32.mrf.mxu3 }
 0xab9   :  { %v865_v62 = vadd.f32 %v2520_v60, %v864_v61  ;;  %v2202_v60 = vld [vmem:[%s3083_s3 + $0x14] sm:$0xf] }
 0xaba   :  { %v1180_v61 = vsel %vm91_vm0, %v2202_v60, 0 }
 0xabb   :  { %v868_v63 = vmul.f32 0.01, %v865_v62  ;;  %1189 = vmatpush.bf16.msrb.mxu2 %v1180_v61 }
 0xabd   :  { %v869_v0 = vmax.f32 %v865_v62, %v868_v63 }
 0xabf   :  { %v881_v1 = vpack.c.bf16 %v869_v0, %v869_v0 }
 0xac0   :  { %v866_v2 = vpop.f32.mrf.mxu3 }
 0xac1   :  { %2134 = vmatmul.msk.bf16.vlgmr.msra.gmra.mxu0 %vm147_vm2, %v881_v1  ;;  %v2268_v2 = vld [vmem:[%s3090_s10 + $0x8] sm:$0xf] }
 0xac2   :  { %v1384_v3 = vsel %vm91_vm0, %v2268_v2, 0  ;;  %v2480_v2 = vld [vmem:[#allocation2 + $0x1b8] sm:$0xff] }
 0xb3e   :  { %v921_v6 = vpop.f32.mrf.mxu0 }
 0xb3f   :  { %v922_v7 = vadd.f32 %v2521_v5, %v921_v6  ;;  %v2463_v5 = vld [vmem:[#allocation2 + $0x150] sm:$0xff] }
 0xb40   :  { %1244 = vmatpush.bf16.msrb.mxu3 %v2463_v5  ;;  %v2478_v5 = vld [vmem:[#allocation2 + $0x1a8] sm:$0xff] }
 0xb41   :  { %2551 = vtanh.f32 %v922_v7  ;;  %930 = vrot.lane.b32.xlu0 %v922_v7, %s2627_s2  ;;  %v2462_v7 = vld [vmem:[#allocation2 + $0x148] sm:$0xff] }
 0xb44   :  { %1245 = vmatpush.bf16.msrb.mxu3 %v2462_v7  ;;  %v2484_v7 = vld [vmem:[%s3087_s7 + $0xd8] sm:$0xff] }
 0xb46   :  { %v923_v9 = vpop.f32.mrf.mxu0 }
 0xb47   :  { %v2552_v10 = vpop.eup %2551  ;;  %v2461_v9 = vld [vmem:[#allocation2 + $0x140] sm:$0xff] }
 0xb48   :  { %v2898_v11 = vadd.f32 %v2552_v10, %v2850_v20  ;;  %v926_v12 = vmul.f32 1.442695, %v2552_v10  ;;  %v2522_v20 = vld [vmem:[%s3091_s11 + $0x1] ss:$0 sm:$0xff]  ;;  %1246 = vmatpush.bf16.msrb.mxu3 %v2461_v9  ;;  %v2468_v10 = vld [vmem:[#allocation2 + $0x178] sm:$0xff]  ;;  %v2483_v9 = vld [vmem:[%s3087_s7 + $0xd0] sm:$0xff] }
 0xb49   :  { %1300 = vmatpush.bf16.msra.mxu0 %v2468_v10  ;;  %v2531_v10 = vld [vmem:[%s3086_s6 + $0xc] ss:$0 sm:$0xff] }
 0xb4a   :  { %2553 = vpow2.f32 %v926_v12  ;;  %v2526_v12 = vld [vmem:[%s3084_s4 + $0x5] ss:$0 sm:$0xff] }
 0xb50   :  { %v2554_v13 = vpop.eup %2553 }
 0xb51   :  { %v928_v14 = vmul.f32 %v2554_v13, %v2819_v8 }
 0xbb3   :  { %v931_v15 = vpop.permute.xlu0 %930 }
 0xbb4   :  { %v933_v16 = vadd.f32 %v931_v15, %v928_v14 }
 0xbb6   :  { %v941_v17 = vpack.c.bf16 %v933_v16, %v933_v16 }
 0xbb8   :  { %2139 = vmatmul.msk.bf16.vlgmr.msra.gmra.mxu2 %vm87_vm1, %v941_v17 }
 0xbb9   :  { %1393 = vmatpush.bf16.msra.mxu2 %v1384_v3  ;;  %v2479_v3 = vld [vmem:[#allocation2 + $0x1b0] sm:$0xff] }
 0xc3b   :  { %v973_v23 = vpop.f32.mrf.mxu2 }
 0xc3c   :  { %v974_v24 = vadd.f32 %v973_v23, %v954_v44  ;;  %v2524_v44 = vld [vmem:[%s3086_s6 + $0x9] ss:$0 sm:$0xff]  ;;  %v2472_v23 = vld [vmem:[%s3087_s7 + $0xb8] sm:$0xff] }
 0xc3d   :  { %1357 = vmatpush.bf16.msra.mxu1 %v2472_v23 }
 0xc3e   :  { %v2905_v8 = vadd.f32 %v2522_v20, %v974_v24  ;;  %v2465_v20 = vld [vmem:[#allocation2 + $0x160] sm:$0xff]  ;;  %v2471_v24 = vld [vmem:[%s3087_s7 + $0xb0] sm:$0xff] }
 0xc40   :  { %v981_v25 = vmul.f32 0.01, %v2905_v8 }
 0xc41   :  { %1358 = vmatpush.bf16.msra.mxu1 %v2471_v24 }
 0xc42   :  { %v982_v26 = vmax.f32 %v2905_v8, %v981_v25  ;;  %v2527_v25 = vld [vmem:[%s3086_s6 + $0xa] ss:$0 sm:$0xff] }
 0xc43   :  { %v975_v45 = vpop.f32.mrf.mxu2 }
 0xc44   :  { %v994_v27 = vpack.c.bf16 %v982_v26, %v982_v26 }
 0xc45   :  { %1359 = vmatpush.bf16.msra.mxu1 %v2470_v31 }
 0xc46   :  { %999 = vrot.lane.b32.xlu1 %v994_v27, %s2628_s27 }
 0xc49   :  { %1360 = vmatpush.bf16.msra.mxu1 %v2469_v32 }
 0xcb8   :  { %v1000_v30 = vpop.permute.xlu1 %999 }
 0xcb9   :  { %2157 = vmatmul.msk.bf16.vlgmr.msra.gmra.mxu3 %vm147_vm2, %v1000_v30 }
 0xd3c   :  { %v1037_v36 = vpop.f32.mrf.mxu3 }
 0xd3d   :  { %v1038_v37 = vadd.f32 %v2523_v35, %v1037_v36 }
 0xd3f   :  { %v1041_v38 = vmul.f32 0.01, %v1038_v37 }
 0xd41   :  { %v1042_v39 = vmax.f32 %v1038_v37, %v1041_v38 }
 0xd43   :  { %v1054_v40 = vpack.c.bf16 %v1042_v39, %v1042_v39 }
 0xd44   :  { %v1039_v41 = vpop.f32.mrf.mxu3 }
 0xd45   :  { %2175 = vmatmul.msk.bf16.vlgmr.msrb.gmra.mxu0 %vm147_vm2, %v1054_v40  ;;  %v2267_v40 = vld [vmem:[%s3089_s9 + $0x8] sm:$0xf] }
 0xd46   :  { %v1403_v41 = vsel %vm91_vm0, %v2267_v40, 0 }
 0xd47   :  { %1412 = vmatpush.bf16.msra.mxu3 %v1403_v41  ;;  %v2488_v41 = vld [vmem:[#allocation2 + $0x1d8] sm:$0xff] }
 0xdc2   :  { %v1094_v46 = vpop.f32.mrf.mxu0 }
 0xdc3   :  { %v1095_v47 = vadd.f32 %v2524_v44, %v1094_v46 }
 0xdc5   :  { %v1098_v48 = vmul.f32 0.01, %v1095_v47 }
 0xdc7   :  { %v1099_v49 = vmax.f32 %v1095_v47, %v1098_v48 }
 0xdc9   :  { %v1111_v50 = vpack.c.bf16 %v1099_v49, %v1099_v49 }
 0xdca   :  { %v1096_v51 = vpop.f32.mrf.mxu0 }
 0xdcb   :  { %2201 = vmatmul.msk.bf16.vlgmr.msrb.gmra.mxu1 %vm147_vm2, %v1111_v50 }
 0xdcc   :  { %1530 = vmatpush.bf16.msrb.mxu1 %v2480_v2 }
 0xdd0   :  { %1531 = vmatpush.bf16.msrb.mxu1 %v2479_v3 }
 0xdd4   :  { %1532 = vmatpush.bf16.msrb.mxu1 %v2478_v5  ;;  %v2494_v5 = vld [vmem:[%s3087_s7 + $0xe8] sm:$0xff] }
 0xe48   :  { %v1151_v53 = vpop.f32.mrf.mxu1 }
 0xe49   :  { %v1152_v54 = vadd.f32 %v2525_v52, %v1151_v53 }
 0xe4b   :  { %2555 = vtanh.f32 %v1152_v54 }
 0xe50   :  { %v1153_v55 = vpop.f32.mrf.mxu1 }
 0xe51   :  { %v2556_v56 = vpop.eup %2555  ;;  %v2476_v55 = vld [vmem:[#allocation2 + $0x198] sm:$0xff] }
 0xe52   :  { %v1156_v57 = vmul.f32 1.442695, %v2556_v56  ;;  %v2935_v58 = vadd.f32 %v2556_v56, %v2898_v11  ;;  %v2467_v11 = vld [vmem:[#allocation2 + $0x170] sm:$0xff] }
 0xe53   :  { %1301 = vmatpush.bf16.msra.mxu0 %v2467_v11  ;;  %v2475_v56 = vld [vmem:[#allocation2 + $0x190] sm:$0xff] }
 0xe54   :  { %2557 = vpow2.f32 %v1156_v57  ;;  %v2474_v57 = vld [vmem:[#allocation2 + $0x188] sm:$0xff] }
 0xe57   :  { %1302 = vmatpush.bf16.msra.mxu0 %v2466_v22 }
 0xe5a   :  { %v2558_v59 = vpop.eup %2557 }
 0xe5b   :  { %1159 = vrot.lane.b32.xlu2 %v2558_v59, %s2626_s19  ;;  %1303 = vmatpush.bf16.msra.mxu0 %v2465_v20  ;;  %v2473_v59 = vld [vmem:[#allocation2 + $0x180] sm:$0xff] }
 0xe5f   :  { %1473 = vmatpush.bf16.msrb.mxu0 %v2476_v55 }
 0xe63   :  { %1474 = vmatpush.bf16.msrb.mxu0 %v2475_v56 }
 0xe67   :  { %1475 = vmatpush.bf16.msrb.mxu0 %v2474_v57 }
 0xe6b   :  { %1476 = vmatpush.bf16.msrb.mxu0 %v2473_v59  ;;  %v2490_v59 = vld [vmem:[#allocation2 + $0x1e8] sm:$0xff] }
 0xeb5   :  { %v1160_v62 = vpop.permute.xlu2 %1159 }
 0xeb6   :  { %v1162_v63 = vmul.f32 %v1160_v62, %v2905_v8 }
 0xeb8   :  { %v1163_v0 = vadd.f32 %v1162_v63, %v1152_v54 }
 0xeba   :  { %v1169_v1 = vpack.c.bf16 %v1163_v0, %v1163_v0 }
 0xebc   :  { %1174 = vrot.lane.b32.xlu0 %v1169_v1, %s2627_s2 }
 0xf2e   :  { %v1175_v6 = vpop.permute.xlu0 %1174 }
 0xf2f   :  { %2204 = vmatmul.msk.bf16.vlgmr.msrb.gmra.mxu2 %vm87_vm1, %v1175_v6 }
 0xf30   :  { %1587 = vmatpush.bf16.msrb.mxu2 %v2484_v7  ;;  %v2536_v7 = vld [vmem:[%s3086_s6 + $0xf] ss:$0 sm:$0xff] }
 0xf34   :  { %1588 = vmatpush.bf16.msrb.mxu2 %v2483_v9 }
 0xf3f   :  { %2270 = vmatmul.msk.bf16.vlgmr.msra.gmra.mxu2 %vm87_vm1, %v1175_v6  ;;  %v2477_v6 = vld [vmem:[#allocation2 + $0x1a0] sm:$0xff] }
 0xf40   :  { %1533 = vmatpush.bf16.msrb.mxu1 %v2477_v6  ;;  %v2493_v6 = vld [vmem:[%s3087_s7 + $0xe0] sm:$0xff] }
 0xfb2   :  { %v1191_v13 = vpop.f32.mrf.mxu2 }
 0xfb3   :  { %v1192_v14 = vadd.f32 %v2526_v12, %v1191_v13 }
 0xfb5   :  { %v1195_v15 = vmul.f32 0.01, %v1192_v14 }
 0xfb7   :  { %v1196_v16 = vmax.f32 %v1192_v14, %v1195_v15 }
 0xfb9   :  { %v1208_v17 = vpack.c.bf16 %v1196_v16, %v1196_v16 }
 0xfba   :  { %v1193_v18 = vpop.f32.mrf.mxu2 }
 0xfbb   :  { %2222 = vmatmul.msk.bf16.vlgmr.msrb.gmra.mxu3 %vm147_vm2, %v1208_v17  ;;  %v2482_v17 = vld [vmem:[%s3087_s7 + $0xc8] sm:$0xff]  ;;  %v2481_v18 = vld [vmem:[%s3087_s7 + $0xc0] sm:$0xff] }
 0xfbc   :  { %1589 = vmatpush.bf16.msrb.mxu2 %v2482_v17  ;;  %v2537_v17 = vld [vmem:[%s3088_s8 + $0x7] ss:$0 sm:$0xff] }
 0xfc0   :  { %1590 = vmatpush.bf16.msrb.mxu2 %v2481_v18 }
 0xfc2   :  { %v1395_v19 = vpop.f32.mrf.mxu2 }
 0xfca   :  { %v1397_v21 = vpop.f32.mrf.mxu2 }
0x103e   :  { %v1248_v26 = vpop.f32.mrf.mxu3 }
0x103f   :  { %v1249_v45 = vadd.f32 %v2527_v25, %v1248_v26  ;;  %v2533_v26 = vld [vmem:[%s3088_s8 + $0x6] ss:$0 sm:$0xff] }
0x1041   :  { %v1252_v27 = vmul.f32 0.01, %v1249_v45 }
0x1043   :  { %v1253_v28 = vmax.f32 %v1249_v45, %v1252_v27 }
0x1045   :  { %v1265_v29 = vpack.c.bf16 %v1253_v28, %v1253_v28 }
0x1046   :  { %v1250_v30 = vpop.f32.mrf.mxu3 }
0x1047   :  { %2240 = vmatmul.msk.bf16.vlgmr.msra.gmra.mxu0 %vm147_vm2, %v1265_v29 }
0x1048   :  { %1684 = vmatpush.bf16.msra.mxu0 %v2488_v41 }
0x10c4   :  { %v1305_v34 = vpop.f32.mrf.mxu0 }
0x10c5   :  { %v1306_v35 = vadd.f32 %v2528_v33, %v1305_v34  ;;  %v2334_v33 = vld [vmem:[%s3083_s3 + $0x1c] sm:$0xf] }
0x10c6   :  { %v1621_v34 = vsel %vm91_vm0, %v2334_v33, 0 }
0x10c7   :  { %v1309_v36 = vmul.f32 0.01, %v1306_v35  ;;  %1630 = vmatpush.bf16.msrb.mxu3 %v1621_v34 }
0x10c9   :  { %v1310_v37 = vmax.f32 %v1306_v35, %v1309_v36 }
0x10cb   :  { %v1322_v38 = vpack.c.bf16 %v1310_v37, %v1310_v37 }
0x10cc   :  { %v1307_v39 = vpop.f32.mrf.mxu0 }
0x10cd   :  { %2266 = vmatmul.msk.bf16.vlgmr.msra.gmra.mxu1 %vm147_vm2, %v1322_v38  ;;  %v1818_v39 = vld [vmem:[%s3093_s13] sm:$0xf] }
0x10ce   :  { %v1822_v40 = vsel %vm91_vm0, %v1818_v39, 0 }
0x114a   :  { %v1362_v43 = vpop.f32.mrf.mxu1 }
0x114b   :  { %v1363_v44 = vadd.f32 %v2529_v42, %v1362_v43  ;;  %v2487_v42 = vld [vmem:[#allocation2 + $0x1d0] sm:$0xff] }
0x114c   :  { %1685 = vmatpush.bf16.msra.mxu0 %v2487_v42 }
0x114d   :  { %2559 = vtanh.f32 %v1363_v44  ;;  %1371 = vrot.lane.b32.xlu1 %v1363_v44, %s2627_s2  ;;  %v2486_v44 = vld [vmem:[#allocation2 + $0x1c8] sm:$0xff] }
0x1150   :  { %1686 = vmatpush.bf16.msra.mxu0 %v2486_v44 }
0x1152   :  { %v1364_v46 = vpop.f32.mrf.mxu1 }
0x1153   :  { %v2560_v47 = vpop.eup %2559  ;;  %v2485_v46 = vld [vmem:[#allocation2 + $0x1c0] sm:$0xff] }
0x1154   :  { %v2983_v48 = vadd.f32 %v2560_v47, %v2935_v58  ;;  %v1367_v49 = vmul.f32 1.442695, %v2560_v47  ;;  %v2530_v58 = vld [vmem:[%s3091_s11 + $0x2] ss:$0 sm:$0xff]  ;;  %1687 = vmatpush.bf16.msra.mxu0 %v2485_v46  ;;  %v2492_v47 = vld [vmem:[#allocation2 + $0x1f8] sm:$0xff] }
0x1155   :  { %1741 = vmatpush.bf16.msra.mxu1 %v2492_v47 }
0x1156   :  { %2561 = vpow2.f32 %v1367_v49  ;;  %v2534_v49 = vld [vmem:[%s3084_s4 + $0x7] ss:$0 sm:$0xff] }
0x115c   :  { %v2562_v50 = vpop.eup %2561 }
0x115d   :  { %v1369_v51 = vmul.f32 %v2562_v50, %v2905_v8 }
0x11bf   :  { %v1372_v52 = vpop.permute.xlu1 %1371 }
0x11c0   :  { %v1374_v53 = vadd.f32 %v1372_v52, %v1369_v51 }
0x11c2   :  { %v1382_v54 = vpack.c.bf16 %v1374_v53, %v1374_v53 }
0x11c4   :  { %2271 = vmatmul.msk.bf16.vlgmr.msra.gmra.mxu3 %vm87_vm1, %v1382_v54 }
0x11c5   :  { %1831 = vmatpush.bf16.msra.mxu3 %v1822_v40 }
0x1247   :  { %v1414_v60 = vpop.f32.mrf.mxu3 }
0x1248   :  { %v1415_v61 = vadd.f32 %v1414_v60, %v1395_v19  ;;  %v2532_v19 = vld [vmem:[%s3086_s6 + $0xd] ss:$0 sm:$0xff]  ;;  %v2496_v60 = vld [vmem:[%s3087_s7 + $0xf8] sm:$0xff] }
0x1249   :  { %1798 = vmatpush.bf16.msra.mxu2 %v2496_v60 }
0x124a   :  { %v2990_v8 = vadd.f32 %v2530_v58, %v1415_v61  ;;  %v2489_v58 = vld [vmem:[#allocation2 + $0x1e0] sm:$0xff]  ;;  %v2495_v61 = vld [vmem:[%s3087_s7 + $0xf0] sm:$0xff] }
0x124c   :  { %v1422_v62 = vmul.f32 0.01, %v2990_v8 }
0x124d   :  { %1799 = vmatpush.bf16.msra.mxu2 %v2495_v61 }
0x124e   :  { %v1423_v63 = vmax.f32 %v2990_v8, %v1422_v62  ;;  %v2535_v62 = vld [vmem:[%s3086_s6 + $0xe] ss:$0 sm:$0xff] }
0x124f   :  { %v1416_v0 = vpop.f32.mrf.mxu3 }
0x1250   :  { %v1435_v1 = vpack.c.bf16 %v1423_v63, %v1423_v63 }
0x1251   :  { %1800 = vmatpush.bf16.msra.mxu2 %v2494_v5 }
0x1252   :  { %1440 = vrot.lane.b32.xlu2 %v1435_v1, %s2628_s27 }
0x1255   :  { %1801 = vmatpush.bf16.msra.mxu2 %v2493_v6 }
0x12ac   :  { %v1441_v4 = vpop.permute.xlu2 %1440 }
0x12ad   :  { %2289 = vmatmul.msk.bf16.vlgmr.msrb.gmra.mxu0 %vm147_vm2, %v1441_v4 }
0x132a   :  { %v1478_v11 = vpop.f32.mrf.mxu0 }
0x132b   :  { %v1479_v12 = vadd.f32 %v2531_v10, %v1478_v11 }
0x132d   :  { %v1482_v13 = vmul.f32 0.01, %v1479_v12 }
0x132f   :  { %v1483_v14 = vmax.f32 %v1479_v12, %v1482_v13 }
0x1331   :  { %v1495_v15 = vpack.c.bf16 %v1483_v14, %v1483_v14 }
0x1332   :  { %v1480_v16 = vpop.f32.mrf.mxu0 }
0x1333   :  { %2307 = vmatmul.msk.bf16.vlgmr.msrb.gmra.mxu1 %vm147_vm2, %v1495_v15  ;;  %v1817_v15 = vld [vmem:[%s3092_s12] sm:$0xf] }
0x1334   :  { %v1841_v16 = vsel %vm91_vm0, %v1817_v15, 0 }
0x1335   :  { %1850 = vmatpush.bf16.msrb.mxu0 %v1841_v16 }
0x13b0   :  { %v1535_v21 = vpop.f32.mrf.mxu1 }
0x13b1   :  { %v1536_v22 = vadd.f32 %v2532_v19, %v1535_v21 }
0x13b3   :  { %v1539_v20 = vmul.f32 0.01, %v1536_v22 }
0x13b5   :  { %v1540_v23 = vmax.f32 %v1536_v22, %v1539_v20 }
0x13b7   :  { %v1552_v24 = vpack.c.bf16 %v1540_v23, %v1540_v23 }
0x13b8   :  { %v1537_v25 = vpop.f32.mrf.mxu1 }
0x13b9   :  { %2333 = vmatmul.msk.bf16.vlgmr.msrb.gmra.mxu2 %vm147_vm2, %v1552_v24 }
0x143c   :  { %v1592_v45 = vpop.f32.mrf.mxu2 }
0x143d   :  { %v1593_v27 = vadd.f32 %v2533_v26, %v1592_v45 }
0x143f   :  { %2563 = vtanh.f32 %v1593_v27 }
0x1444   :  { %v1594_v28 = vpop.f32.mrf.mxu2 }
0x1445   :  { %v2564_v29 = vpop.eup %2563 }
0x1446   :  { %v1597_v30 = vmul.f32 1.442695, %v2564_v29  ;;  %v3020_v31 = vadd.f32 %v2564_v29, %v2983_v48  ;;  %v2491_v48 = vld [vmem:[#allocation2 + $0x1f0] sm:$0xff] }
0x1447   :  { %1742 = vmatpush.bf16.msra.mxu1 %v2491_v48 }
0x1448   :  { %2565 = vpow2.f32 %v1597_v30  ;;  %v2538_v30 = vld [vmem:[%s3094_s14] ss:$0 sm:$0xff] }
0x144b   :  { %1743 = vmatpush.bf16.msra.mxu1 %v2490_v59 }
0x144e   :  { %v2566_v32 = vpop.eup %2565 }
0x144f   :  { %1600 = vrot.lane.b32.xlu0 %v2566_v32, %s2626_s19  ;;  %1744 = vmatpush.bf16.msra.mxu1 %v2489_v58 }
0x14c1   :  { %v1601_v35 = vpop.permute.xlu0 %1600 }
0x14c2   :  { %v1603_v36 = vmul.f32 %v1601_v35, %v2990_v8 }
0x14c4   :  { %v1604_v37 = vadd.f32 %v1603_v36, %v1593_v27 }
0x14c6   :  { %v1610_v38 = vpack.c.bf16 %v1604_v37, %v1604_v37 }
0x14c8   :  { %1615 = vrot.lane.b32.xlu1 %v1610_v38, %s2627_s2 }
0x153a   :  { %v1616_v43 = vpop.permute.xlu1 %1615 }
0x153b   :  { %2336 = vmatmul.msk.bf16.vlgmr.msrb.gmra.mxu3 %vm87_vm1, %v1616_v43 }
0x154b   :  { %2399 = vmatmul.msk.bf16.vlgmr.msra.gmra.mxu3 %vm87_vm1, %v1616_v43 }
0x15be   :  { %v1632_v50 = vpop.f32.mrf.mxu3 }
0x15bf   :  { %v1633_v51 = vadd.f32 %v2534_v49, %v1632_v50 }
0x15c1   :  { %v1636_v52 = vmul.f32 0.01, %v1633_v51 }
0x15c3   :  { %v1637_v53 = vmax.f32 %v1633_v51, %v1636_v52 }
0x15c5   :  { %v1649_v54 = vpack.c.bf16 %v1637_v53, %v1637_v53 }
0x15c6   :  { %v1634_v55 = vpop.f32.mrf.mxu3 }
0x15c7   :  { %2354 = vmatmul.msk.bf16.vlgmr.msra.gmra.mxu0 %vm147_vm2, %v1649_v54 }
0x15ce   :  { %v1833_v56 = vpop.f32.mrf.mxu3 }
0x15d6   :  { %v1835_v57 = vpop.f32.mrf.mxu3 }
0x1644   :  { %v1689_v63 = vpop.f32.mrf.mxu0 }
0x1645   :  { %v1690_v0 = vadd.f32 %v2535_v62, %v1689_v63 }
0x1647   :  { %v1693_v1 = vmul.f32 0.01, %v1690_v0 }
0x1649   :  { %v1694_v2 = vmax.f32 %v1690_v0, %v1693_v1 }
0x164b   :  { %v1706_v3 = vpack.c.bf16 %v1694_v2, %v1694_v2 }
0x164c   :  { %v1691_v4 = vpop.f32.mrf.mxu0 }
0x164d   :  { %2372 = vmatmul.msk.bf16.vlgmr.msra.gmra.mxu1 %vm147_vm2, %v1706_v3 }
0x16ca   :  { %v1746_v9 = vpop.f32.mrf.mxu1 }
0x16cb   :  { %v1747_v10 = vadd.f32 %v2536_v7, %v1746_v9 }
0x16cd   :  { %v1750_v11 = vmul.f32 0.01, %v1747_v10 }
0x16cf   :  { %v1751_v12 = vmax.f32 %v1747_v10, %v1750_v11 }
0x16d1   :  { %v1763_v13 = vpack.c.bf16 %v1751_v12, %v1751_v12 }
0x16d2   :  { %v1748_v14 = vpop.f32.mrf.mxu1 }
0x16d3   :  { %2398 = vmatmul.msk.bf16.vlgmr.msra.gmra.mxu2 %vm147_vm2, %v1763_v13 }
0x1756   :  { %v1803_v18 = vpop.f32.mrf.mxu2 }
0x1757   :  { %v1804_v19 = vadd.f32 %v2537_v17, %v1803_v18 }
0x1759   :  { %2567 = vtanh.f32 %v1804_v19  ;;  %1812 = vrot.lane.b32.xlu2 %v1804_v19, %s2627_s2 }
0x175e   :  { %v1805_v21 = vpop.f32.mrf.mxu2 }
0x175f   :  { %v2568_v22 = vpop.eup %2567 }
0x1760   :  { %v1816_v20 = vadd.f32 %v2568_v22, %v3020_v31  ;;  %v1808_v24 = vmul.f32 1.442695, %v2568_v22 }
0x1762   :  { %v1862_v23 = vsel %vm87_vm1, %v1816_v20, 0.0  ;;  %2569 = vpow2.f32 %v1808_v24 }
0x1763   :  { %1863 = vadd.xlane.f32.xlu0 %v1862_v23 }
0x1768   :  { %v2570_v25 = vpop.eup %2569 }
0x1769   :  { %v1810_v26 = vmul.f32 %v2570_v25, %v2990_v8 }
0x17b3   :  { %v1813_v45 = vpop.permute.xlu2 %1812 }
0x17b4   :  { %v1815_v27 = vadd.f32 %v1813_v45, %v1810_v26 }
0x17b6   :  { %v1820_v28 = vpack.c.bf16 %v1815_v27, %v1815_v27 }
0x17b8   :  { %2400 = vmatmul.msk.bf16.vlgmr.msrb.gmra.mxu0 %vm87_vm1, %v1820_v28 }
0x17d6   :  { %v1864_v29 = vpop.xlane.xlu0 %1863 }
0x17d7   :  { %1866 = vst.msk [vmem:[%s3096_s16] sm:$0xff] %vm1865_vm3, %v1864_v29 }
0x1835   :  { %v1852_v31 = vpop.f32.mrf.mxu0 }
0x1836   :  { %v1853_v8 = vadd.f32 %v1852_v31, %v1833_v56 }
0x1838   :  { %v1859_v32 = vadd.f32 %v2538_v30, %v1853_v8 }
0x183a   :  { %1861 = vst.msk [vmem:[#allocation5] sm:$0xff] %vm1860_vm4, %v1859_v32 }
0x183b   :  { %1877 = dma.vmem_to_hbm [thread:$0]  %s1873_s21, 128, %s1875_s23, [#allocation4]  }
0x183d   :  { %v1854_v33 = vpop.f32.mrf.mxu0 }
0x183e   :  { %2621 = dma.done.wait [#allocation4], 128  }
0x183f   :  { %2622 = vsyncadd [#allocation4], 4294967168 }
0x1840   :  { %1886 = vsyncpa [#allocation3], 1 }
0x1841   :  { %1887 = vsyncpa [#allocation4], 1 }

</bundles_post_ra>
